<compile_context>
chip_gen: v5e
topology: v5e:2x2
jax: 0.10.0
libtpu: 0.0.40
codegen_flags: <defaults>
</compile_context>

<pallas_src>
import math

import jax
import jax.numpy as jnp
from jax.experimental import pallas as pl
from jax.experimental.pallas import tpu as pltpu

_HI = jax.lax.Precision.HIGHEST


def _make_kernel(shared, S, L, GH, rows_wk, rows_ex, rows_wf, rows_bv, rows_bk, rows_bf):
    """Build the pooling kernel for one grid step over a (tb_g*S, L) packed slab."""

    def _compute(xk, xv, c_ref, out_ref):
        # Single fused constant stack (resident; one DMA, one double-buffer).
        wv = c_ref[0:L, :]                        # (L, L)   block-diag linear_values^T
        wk = c_ref[rows_wk:rows_wk + L, 0:GH]     # (L, GH)  block-diag linear_keys^T
        ex = c_ref[rows_ex:rows_ex + GH, :]       # (GH, L)  head -> dim_per_head expand
        wf = c_ref[rows_wf:rows_wf + L, :]        # (L, L)   block-diag final_linear^T
        bv = c_ref[rows_bv:rows_bv + 1, :]        # (1, L)
        bk = c_ref[rows_bk:rows_bk + 1, 0:GH]     # (1, GH)
        bf = c_ref[rows_bf:rows_bf + 1, :]        # (1, L)

        rows = xk.shape[0]
        tbg = rows // S

        # Projections: lane-dense 128-wide MXU matmuls over the whole tile.
        vals = jnp.dot(xv, wv, preferred_element_type=jnp.float32, precision=_HI) + bv
        scores = jnp.dot(xk, wk, preferred_element_type=jnp.float32, precision=_HI) + bk

        # Per-(batch, head) softmax over the sequence axis (sublane groups of S).
        s3 = scores.reshape(tbg, S, GH)
        m = jnp.max(s3, axis=1, keepdims=True)
        e = jnp.exp(s3 - m)
        denom = jnp.sum(e, axis=1, keepdims=True)
        attn = (e * pl.reciprocal(denom, approx=False)).reshape(rows, GH)
        # TODO(synk): nn.Dropout(p=0.1) on attn is identity in eval mode; training-mode
        # dropout would need pltpu.prng_seed / pltpu.prng_random_bits here.

        # Broadcast each head's weight across its dim_per_head value columns (exact 0/1
        # matmul), then reduce over the sequence with a sublane-group sum (this replaces
        # the old O(tb^2) segmented-sum pool matmul).
        attn_full = jnp.dot(attn, ex, preferred_element_type=jnp.float32, precision=_HI)
        ctx = (attn_full * vals).reshape(tbg, S, L).sum(axis=1)          # (tbg, L)

        # Batched final_linear (block-diag, columns pre-permuted for torch's unshape).
        out = jnp.dot(ctx, wf, preferred_element_type=jnp.float32, precision=_HI) + bf
        out_ref[...] = out.astype(out_ref.dtype)

    if shared:
        def kernel(kv_ref, c_ref, out_ref):     # key is value: single input DMA
            x = kv_ref[...]
            _compute(x, x, c_ref, out_ref)
    else:
        def kernel(k_ref, v_ref, c_ref, out_ref):
            _compute(k_ref[...], v_ref[...], c_ref, out_ref)
    return kernel


def _choose_tiles(groups, tb_g_max):
    """Packed-group tile (multiple of 8 when multi-step) and an even grid length."""
    if groups <= 8:
        return groups, 1                 # single step; blocks equal full array dims
    n_blk = max(2, -(-groups // tb_g_max))
    if n_blk % 2:
        n_blk += 1                       # even grid: both v7x TensorCores get work
    tb_g = -(-groups // n_blk)
    tb_g = -(-tb_g // 8) * 8             # sublane-aligned output block
    n_blk = -(-groups // tb_g)
    if n_blk > 1 and n_blk % 2:
        n_blk += 1
    return tb_g, n_blk


def _block_diag(m, G):
    r, c = m.shape
    if G == 1:
        return m
    eye = jnp.eye(G, dtype=m.dtype)
    return (eye[:, None, :, None] * m[None, :, None, :]).reshape(G * r, G * c)


def multi_headed_pooling(key, value, params, head_count, *, tb_g_max=256):
    """key, value: (B, S, D) float32.  Returns (B, D) (module default: D_out == D)."""
    wk, bk, wv, bv, wf, bf = params
    B, S, D = key.shape
    H = head_count
    dph = D // H
    D_out = wf.shape[0]
    assert D_out == D, "TODO(synk): model_dim_out != model_dim needs a wider output pack"

    # Lane packing: G batch elements side by side per 128-lane row (G=4 for D=32).
    G = 128 // D if (D <= 128 and 128 % D == 0) else 1
    L = G * D
    GH = G * H

    shared = key is value
    groups = -(-B // G)
    tb_g, n_blk = _choose_tiles(groups, tb_g_max)
    groups_pad = tb_g * n_blk
    B_pad = groups_pad * G

    def pack(x):
        if B_pad != B:
            x = jnp.pad(x, ((0, B_pad - B), (0, 0), (0, 0)))
        x = x.reshape(groups_pad, G, S, D).transpose(0, 2, 1, 3)
        return x.reshape(groups_pad * S, L)

    key_p = pack(key)
    val_p = key_p if shared else pack(value)

    # ---- fused constant stack (single operand): block-diag weights + biases --------
    f32 = jnp.float32
    perm = (jnp.arange(D) % dph) * H + (jnp.arange(D) // dph)   # torch unshape ordering
    wf_local = wf[:, perm].T                                    # (D, D)
    expand = (jnp.arange(H)[:, None] == (jnp.arange(D)[None, :] // dph)).astype(f32)

    wv_bd = _block_diag(wv.T.astype(f32), G)                                     # (L, L)
    wk_bd = jnp.zeros((L, L), f32).at[:, :GH].set(_block_diag(wk.T.astype(f32), G))
    exr = -(-GH // 8) * 8
    ex_bd = jnp.zeros((exr, L), f32).at[:GH, :].set(_block_diag(expand, G))
    wf_bd = _block_diag(wf_local.astype(f32), G)                                 # (L, L)
    bv_bd = jnp.zeros((8, L), f32).at[0, :].set(jnp.tile(bv.astype(f32), G))
    bk_bd = jnp.zeros((8, L), f32).at[0, :GH].set(jnp.tile(bk.astype(f32), G))
    bf_bd = jnp.zeros((8, L), f32).at[0, :].set(jnp.tile(bf.astype(f32), G))

    rows_wk = L
    rows_ex = 2 * L
    rows_wf = 2 * L + exr
    rows_bv = 3 * L + exr
    rows_bk = rows_bv + 8
    rows_bf = rows_bk + 8
    const = jnp.concatenate([wv_bd, wk_bd, ex_bd, wf_bd, bv_bd, bk_bd, bf_bd], axis=0)
    r_total = const.shape[0]                       # 3L + exr + 24 (multiple of 8)

    kernel = _make_kernel(shared, S, L, GH, rows_wk, rows_ex, rows_wf,
                          rows_bv, rows_bk, rows_bf)

    blk_rows = tb_g * S
    data_spec = pl.BlockSpec((blk_rows, L), lambda b: (b, 0))
    const_spec = pl.BlockSpec((r_total, L), lambda b: (0, 0))
    if shared:
        inputs, in_specs = (key_p, const), [data_spec, const_spec]
    else:
        inputs, in_specs = (key_p, val_p, const), [data_spec, data_spec, const_spec]

    # Explicit scoped-VMEM sized to the double-buffered working set (+ headroom),
    # kept well under v7x's 64 MiB/TC.
    n_in = 1 if shared else 2
    work = 4 * (n_in * blk_rows * L + r_total * L + tb_g * L)
    vmem_limit = min(48 << 20, max(16 << 20, 2 * work + (8 << 20)))

    out = pl.pallas_call(
        kernel,
        out_shape=jax.ShapeDtypeStruct((groups_pad, L), jnp.float32),
        grid=(n_blk,),
        in_specs=in_specs,
        out_specs=pl.BlockSpec((tb_g, L), lambda b: (b, 0)),
        compiler_params=pltpu.CompilerParams(
            dimension_semantics=("parallel",),
            vmem_limit_bytes=vmem_limit),
    )(*inputs)

    return out.reshape(groups_pad * G, D)[:B]


def reference(key, value, params, head_count):
    """Pure-JAX transcription of the PyTorch forward (default config path)."""
    wk, bk, wv, bv, wf, bf = params
    B, S, D = key.shape
    H = head_count
    dph = D // H
    hp = jax.lax.Precision.HIGHEST
    scores = jnp.einsum("bsd,hd->bsh", key, wk, precision=hp) + bk            # (B,S,H)
    vals = jnp.einsum("bsd,ed->bse", value, wv, precision=hp) + bv            # (B,S,D)
    scores = jnp.transpose(scores.reshape(B, S, H, 1), (0, 2, 1, 3))[..., 0]  # (B,H,S)
    vals = jnp.transpose(vals.reshape(B, S, H, dph), (0, 2, 1, 3))            # (B,H,S,d)
    attn = jax.nn.softmax(scores, axis=-1)
    ctx = jnp.sum(attn[..., None] * vals, axis=-2)                            # (B,H,d)
    ctx = jnp.transpose(ctx, (0, 2, 1)).reshape(B, H * dph)                   # k = di*H + h
    return jnp.einsum("bd,od->bo", ctx, wf, precision=hp) + bf


if __name__ == "__main__":
    S, D, H = 8, 32, 4

    root = jax.random.PRNGKey(0)
    ks = jax.random.split(root, 8)

    # Deterministic parameter init (shapes match the module's nn.Linear weights).
    def u(k, shape, fan_in):
        bound = 1.0 / math.sqrt(fan_in)
        return jax.random.uniform(k, shape, jnp.float32, -bound, bound)

    wk = u(ks[0], (H, D), D)        # linear_keys.weight
    bk = u(ks[1], (H,), D)          # linear_keys.bias
    wv = u(ks[2], (D, D), D)        # linear_values.weight
    bv = u(ks[3], (D,), D)          # linear_values.bias
    wf = u(ks[4], (D, D), D)        # final_linear.weight
    bf = u(ks[5], (D,), D)          # final_linear.bias
    params = (wk, bk, wv, bv, wf, bf)

    # 1) key != value, batch a multiple of the lane-pack group (single grid step).
    B = 16
    key_in = jax.random.normal(ks[6], (B, S, D), jnp.float32)
    val_in = jax.random.normal(ks[7], (B, S, D), jnp.float32)
    out = jax.block_until_ready(multi_headed_pooling(key_in, val_in, params, H))
    ref = reference(key_in, val_in, params, H)
    assert out.shape == (B, D), out.shape
    assert jnp.allclose(out, ref, atol=1e-5, rtol=1e-5), float(jnp.max(jnp.abs(out - ref)))

    # 2) key is value (self-pooling, single input DMA) with batch not a multiple of G.
    B2 = 6
    kv = key_in[:B2]
    out2 = jax.block_until_ready(multi_headed_pooling(kv, kv, params, H))
    ref2 = reference(kv, kv, params, H)
    assert out2.shape == (B2, D), out2.shape
    assert jnp.allclose(out2, ref2, atol=1e-5, rtol=1e-5), float(jnp.max(jnp.abs(out2 - ref2)))

    # 3) multi-step path: even grid, 8-aligned packed-group tiles, batch padding.
    B3 = 40
    key3 = jax.random.normal(jax.random.fold_in(root, 1), (B3, S, D), jnp.float32)
    val3 = jax.random.normal(jax.random.fold_in(root, 2), (B3, S, D), jnp.float32)
    out3 = jax.block_until_ready(multi_headed_pooling(key3, val3, params, H))
    ref3 = reference(key3, val3, params, H)
    assert out3.shape == (B3, D), out3.shape
    assert jnp.allclose(out3, ref3, atol=1e-5, rtol=1e-5), float(jnp.max(jnp.abs(out3 - ref3)))

    print("KERNEL_OK")
</pallas_src>

<mosaic_0001>
module attributes {stable_mosaic.version = 11 : i64} {
  func.func @kernel(%arg0: i32, %arg1: memref<32x128xf32, #tpu.memory_space<vmem>>, %arg2: memref<32x128xf32, #tpu.memory_space<vmem>>, %arg3: memref<424x128xf32, #tpu.memory_space<vmem>>, %arg4: memref<4x128xf32, #tpu.memory_space<vmem>>) attributes {dimension_semantics = [#tpu.dimension_semantics<parallel>], iteration_bounds = array<i64: 1>, scalar_prefetch = 0 : i64, scratch_operands = 0 : i64, tpu.core_type = #tpu.core_type<tc>, window_params = [{transform_indices = @transform_0, window_bounds = array<i64: 32, 128>}, {transform_indices = @transform_1, window_bounds = array<i64: 32, 128>}, {pipeline_mode = #tpu.pipeline_mode<synchronous>, transform_indices = @transform_2, window_bounds = array<i64: 424, 128>}, {transform_indices = @transform_3, window_bounds = array<i64: 4, 128>}]} {
    %c0 = arith.constant 0 : index
    %c0_0 = arith.constant 0 : index
    %0 = vector.load %arg1[%c0, %c0_0] : memref<32x128xf32, #tpu.memory_space<vmem>>, vector<32x128xf32>
    %c0_1 = arith.constant 0 : index
    %c0_2 = arith.constant 0 : index
    %1 = vector.load %arg2[%c0_1, %c0_2] : memref<32x128xf32, #tpu.memory_space<vmem>>, vector<32x128xf32>
    %c0_3 = arith.constant 0 : index
    %c0_4 = arith.constant 0 : index
    %2 = vector.load %arg3[%c0_3, %c0_4] : memref<424x128xf32, #tpu.memory_space<vmem>>, vector<128x128xf32>
    %c128 = arith.constant 128 : index
    %c0_5 = arith.constant 0 : index
    %3 = vector.load %arg3[%c128, %c0_5] : memref<424x128xf32, #tpu.memory_space<vmem>>, vector<128x16xf32>
    %c256 = arith.constant 256 : index
    %c0_6 = arith.constant 0 : index
    %4 = vector.load %arg3[%c256, %c0_6] : memref<424x128xf32, #tpu.memory_space<vmem>>, vector<16x128xf32>
    %c272 = arith.constant 272 : index
    %c0_7 = arith.constant 0 : index
    %5 = vector.load %arg3[%c272, %c0_7] : memref<424x128xf32, #tpu.memory_space<vmem>>, vector<128x128xf32>
    %c400 = arith.constant 400 : index
    %c0_8 = arith.constant 0 : index
    %6 = vector.load %arg3[%c400, %c0_8] : memref<424x128xf32, #tpu.memory_space<vmem>>, vector<1x128xf32>
    %c408 = arith.constant 408 : index
    %c0_9 = arith.constant 0 : index
    %7 = vector.load %arg3[%c408, %c0_9] : memref<424x128xf32, #tpu.memory_space<vmem>>, vector<1x16xf32>
    %c416 = arith.constant 416 : index
    %c0_10 = arith.constant 0 : index
    %8 = vector.load %arg3[%c416, %c0_10] : memref<424x128xf32, #tpu.memory_space<vmem>>, vector<1x128xf32>
    %cst = arith.constant dense<0.000000e+00> : vector<32x128xf32>
    %9 = tpu.matmul %1, %2, %cst {dimension_numbers = #tpu.dot_dimension_numbers<[1], [0], [0], [1], [0, 0, 1, 1], [], []>, precision = #tpu.contract_precision<fp32>} : vector<32x128xf32>, vector<128x128xf32>, vector<32x128xf32> -> vector<32x128xf32>
    %10 = vector.broadcast %6 : vector<1x128xf32> to vector<32x128xf32>
    %11 = arith.addf %9, %10 : vector<32x128xf32>
    %cst_11 = arith.constant dense<0.000000e+00> : vector<32x16xf32>
    %12 = tpu.matmul %0, %3, %cst_11 {dimension_numbers = #tpu.dot_dimension_numbers<[1], [0], [0], [1], [0, 0, 1, 1], [], []>, precision = #tpu.contract_precision<fp32>} : vector<32x128xf32>, vector<128x16xf32>, vector<32x16xf32> -> vector<32x16xf32>
    %13 = vector.broadcast %7 : vector<1x16xf32> to vector<32x16xf32>
    %14 = arith.addf %12, %13 : vector<32x16xf32>
    %15 = vector.shape_cast %14 : vector<32x16xf32> to vector<4x8x16xf32>
    %cst_12 = arith.constant dense<0xFF800000> : vector<4x16xf32>
    %16 = vector.multi_reduction <maximumf>, %15, %cst_12 [1] : vector<4x8x16xf32> to vector<4x16xf32>
    %17 = vector.shape_cast %16 : vector<4x16xf32> to vector<4x1x16xf32>
    %18 = vector.broadcast %17 : vector<4x1x16xf32> to vector<4x8x16xf32>
    %19 = arith.subf %15, %18 : vector<4x8x16xf32>
    %20 = math.exp %19 : vector<4x8x16xf32>
    %cst_13 = arith.constant dense<0.000000e+00> : vector<4x16xf32>
    %21 = vector.multi_reduction <add>, %20, %cst_13 [1] : vector<4x8x16xf32> to vector<4x16xf32>
    %22 = vector.shape_cast %21 : vector<4x16xf32> to vector<4x1x16xf32>
    %23 = tpu.reciprocal %22 : vector<4x1x16xf32> -> vector<4x1x16xf32>
    %24 = vector.broadcast %23 : vector<4x1x16xf32> to vector<4x8x16xf32>
    %25 = arith.mulf %20, %24 : vector<4x8x16xf32>
    %26 = vector.shape_cast %25 : vector<4x8x16xf32> to vector<32x16xf32>
    %cst_14 = arith.constant dense<0.000000e+00> : vector<32x128xf32>
    %27 = tpu.matmul %26, %4, %cst_14 {dimension_numbers = #tpu.dot_dimension_numbers<[1], [0], [0], [1], [0, 0, 1, 1], [], []>, precision = #tpu.contract_precision<fp32>} : vector<32x16xf32>, vector<16x128xf32>, vector<32x128xf32> -> vector<32x128xf32>
    %28 = arith.mulf %27, %11 : vector<32x128xf32>
    %29 = vector.shape_cast %28 : vector<32x128xf32> to vector<4x8x128xf32>
    %cst_15 = arith.constant dense<0.000000e+00> : vector<4x128xf32>
    %30 = vector.multi_reduction <add>, %29, %cst_15 [1] : vector<4x8x128xf32> to vector<4x128xf32>
    %cst_16 = arith.constant dense<0.000000e+00> : vector<4x128xf32>
    %31 = tpu.matmul %30, %5, %cst_16 {dimension_numbers = #tpu.dot_dimension_numbers<[1], [0], [0], [1], [0, 0, 1, 1], [], []>, precision = #tpu.contract_precision<fp32>} : vector<4x128xf32>, vector<128x128xf32>, vector<4x128xf32> -> vector<4x128xf32>
    %32 = vector.broadcast %8 : vector<1x128xf32> to vector<4x128xf32>
    %33 = arith.addf %31, %32 : vector<4x128xf32>
    %c0_17 = arith.constant 0 : index
    %c0_18 = arith.constant 0 : index
    %34 = vector.load %arg4[%c0_17, %c0_18] : memref<4x128xf32, #tpu.memory_space<vmem>>, vector<4x128xf32>
    tpu.vector_store %arg4[%c0_17, %c0_18], %33 {strides = array<i32>} : memref<4x128xf32, #tpu.memory_space<vmem>>, vector<4x128xf32>,
    return
  }
  func.func @transform_0(%arg0: i32) -> (i32, i32) {
    %c0_i32 = arith.constant 0 : i32
    %c0_i32_0 = arith.constant 0 : i32
    return %arg0, %c0_i32 : i32, i32
  }
  func.func @transform_1(%arg0: i32) -> (i32, i32) {
    %c0_i32 = arith.constant 0 : i32
    %c0_i32_0 = arith.constant 0 : i32
    return %arg0, %c0_i32 : i32, i32
  }
  func.func @transform_2(%arg0: i32) -> (i32, i32) {
    %c0_i32 = arith.constant 0 : i32
    %c0_i32_0 = arith.constant 0 : i32
    %c0_i32_1 = arith.constant 0 : i32
    return %c0_i32, %c0_i32_0 : i32, i32
  }
  func.func @transform_3(%arg0: i32) -> (i32, i32) {
    %c0_i32 = arith.constant 0 : i32
    %c0_i32_0 = arith.constant 0 : i32
    return %arg0, %c0_i32 : i32, i32
  }
}

</mosaic_0001>

<bundles_post_ra>
// kernel: tpu_custom_call.1
= control target key start
LH: loop header
LB: loop body
LE: loop exit
PB: predicated region body
PF: predicated region fallthrough
CT: control target
= control target key end

     0   :  { %8 = vsyncpa [#allocation3], 0  ;;  %s2851_s0 = inlined_call_operand.hbm [shape: f32[32,128], index: 0, kind: input, shape index: {}]   ;;  %s2852_s1 = inlined_call_operand.hbm [shape: f32[32,128], index: 1, kind: input, shape index: {}]   ;;  %s2853_s2 = inlined_call_operand.hbm [shape: f32[424,128], index: 2, kind: input, shape index: {}]   ;;  %s2854_s3 = inlined_call_operand.hbm [shape: f32[4,128], index: 3, kind: output, shape index: {}]  }
   0x1   :  { %9 = vsyncpa [#allocation6], 0 }
   0x2   :  { %10 = vsyncpa [#allocation4], 0  ;;  %s28_s14 = sshll.u32 %s2852_s1, 4  ;;  %s1913_s15 = smov [#allocation5]   ;;  %s29_s14 = int_to_ptr.hbm [resolvable:$true] %s28_s14 }
   0x3   :  { %s30_s16 = sshll.u32 %s1913_s15, 4  ;;  %s15_s19 = sshll.u32 %s2851_s0, 4  ;;  %s31_s16 = int_to_ptr.vmem [resolvable:$true] %s30_s16  ;;  %s16_s19 = int_to_ptr.hbm [resolvable:$true] %s15_s19 }
   0x4   :  { %s1914_s20 = smov 128   ;;  %s1915_s21 = smov 8  }
   0x5   :  { %36 = dma.hbm_to_vmem [thread:$0]  %s29_s14, 512, %s31_s16, [#allocation6], %s1914_s20, %s1914_s20, %s1915_s21  }
   0x6   :  { %s1916_s22 = smov [#allocation2]   ;;  %s41_s26 = sshll.u32 %s2853_s2, 4  ;;  %s42_s26 = int_to_ptr.hbm [resolvable:$true] %s41_s26 }
   0x7   :  { %s17_s23 = sshll.u32 %s1916_s22, 4  ;;  %s1917_s1 = smov [#allocation7]   ;;  %s18_s23 = int_to_ptr.vmem [resolvable:$true] %s17_s23 }
   0x8   :  { %23 = dma.hbm_to_vmem [thread:$0]  %s16_s19, 512, %s18_s23, [#allocation3], %s1914_s20, %s1914_s20, %s1915_s21  }
   0x9   :  { %s43_s27 = sshll.u32 %s1917_s1, 4  ;;  %s44_s27 = int_to_ptr.vmem [resolvable:$true] %s43_s27 }
   0xa   :  { %49 = dma.hbm_to_vmem [thread:$0]  %s42_s26, 6784, %s44_s27, [#allocation6], %s1914_s20, %s1914_s20, %s1915_s21  }
   0xb   :  { %1907 = dma.done.wait [#allocation3], 512  }
   0xc   :  { %1908 = vsyncadd [#allocation3], 4294966784 }
   0xd   :  { %1909 = dma.done.wait [#allocation6], 7296  }
   0xe   :  { %1910 = vsyncadd [#allocation6], 4294960000  ;;  %v85_v0 = vld [vmem:[#allocation7 + $0x78] sm:$0xff]  ;;  %v84_v1 = vld [vmem:[#allocation7 + $0x70] sm:$0xff]  ;;  %vm993_vm0 = vcmask 130048   ;;  %s1918_s0 = smov [#allocation8]  }
   0xf   :  { %v83_v2 = vld [vmem:[#allocation7 + $0x68] sm:$0xff]  ;;  %v1948_v3 = vand.u32 4294901760, %v85_v0  ;;  %v1950_v4 = vand.u32 4294901760, %v84_v1  ;;  %v82_v6 = vld [vmem:[#allocation7 + $0x60] sm:$0xff]  ;;  %v81_v7 = vld [vmem:[#allocation7 + $0x58] sm:$0xff]  ;;  %s1773_s2 = sshll.u32 %s1918_s0, 4  ;;  %s1774_s2 = int_to_ptr.vmem [resolvable:$true] %s1773_s2 }
  0x10   :  { %v1952_v5 = vand.u32 4294901760, %v83_v2  ;;  %v80_v8 = vld [vmem:[#allocation7 + $0x50] sm:$0xff]  ;;  %v1954_v9 = vand.u32 4294901760, %v82_v6  ;;  %v1956_v10 = vand.u32 4294901760, %v81_v7  ;;  %v79_v12 = vld [vmem:[#allocation7 + $0x48] sm:$0xff]  ;;  %v78_v13 = vld [vmem:[#allocation7 + $0x40] sm:$0xff] }
  0x11   :  { %v1958_v11 = vand.u32 4294901760, %v80_v8  ;;  %125 = vmatpush.msra.mxu0 %v1948_v3  ;;  %v1962_v14 = vsub.f32 %v85_v0, %v1948_v3  ;;  %v1965_v15 = vsub.f32 %v84_v1, %v1950_v4  ;;  %372 = vmatpush.msra.mxu3 %v1948_v3  ;;  %v1971_v17 = vand.u32 4294901760, %v79_v12  ;;  %v77_v18 = vld [vmem:[#allocation7 + $0x38] sm:$0xff]  ;;  %v76_v29 = vld [vmem:[#allocation7 + $0x30] sm:$0xff]  ;;  %v75_v36 = vld [vmem:[#allocation7 + $0x28] sm:$0xff]  ;;  %s1775_s30 = sshll.u32 %s2854_s3, 4  ;;  %s1776_s30 = int_to_ptr.hbm [resolvable:$true] %s1775_s30 }
  0x12   :  { %v1969_v16 = vsub.f32 %v83_v2, %v1952_v5  ;;  %v1974_v19 = vsub.f32 %v82_v6, %v1954_v9  ;;  %v1977_v20 = vsub.f32 %v81_v7, %v1956_v10  ;;  %v1979_v21 = vand.u32 4294901760, %v78_v13  ;;  %v74_v43 = vld [vmem:[#allocation7 + $0x20] sm:$0xff]  ;;  %v73_v49 = vld [vmem:[#allocation7 + $0x18] sm:$0xff]  ;;  %v72_v55 = vld [vmem:[#allocation7 + $0x10] sm:$0xff] }
  0x13   :  { %v1982_v22 = vsub.f32 %v80_v8, %v1958_v11  ;;  %127 = vmatpush.msra.mxu0 %v1950_v4  ;;  %304 = vmatpush.msra.mxu2 %v1962_v14  ;;  %v191_v23 = vand.u32 4294901760, %v1962_v14  ;;  %v2869_v24 = vand.u32 4294901760, %v1965_v15  ;;  %v1991_v27 = vand.u32 4294901760, %v77_v18  ;;  %v66_v56 = vld [vmem:[#allocation5] sm:$0xff]  ;;  %v71_v62 = vld [vmem:[#allocation7 + $0x8] sm:$0xff]  ;;  %v101_v6 = vld [vmem:[#allocation7 + $0xf8] sm:$0xff] }
  0x14   :  { %v2866_v25 = vand.u32 4294901760, %v1969_v16  ;;  %374 = vmatpush.msra.mxu3 %v1950_v4  ;;  %v2865_v26 = vand.u32 4294901760, %v1974_v19  ;;  %v1994_v28 = vsub.f32 %v79_v12, %v1971_v17  ;;  %v2863_v33 = vand.u32 4294901760, %v1977_v20  ;;  %v70_v12 = vld [vmem:[#allocation7] sm:$0xff] }
  0x15   :  { %129 = vmatpush.msra.mxu0 %v1952_v5  ;;  %307 = vmatpush.msra.mxu2 %v1965_v15  ;;  %v192_v30 = vsub.f32 %v1962_v14, %v191_v23  ;;  %v198_v31 = vsub.f32 %v1965_v15, %v2869_v24  ;;  %v2862_v34 = vand.u32 4294901760, %v1982_v22  ;;  %v2011_v35 = vsub.f32 %v78_v13, %v1979_v21  ;;  %v95_v24 = vld [vmem:[#allocation7 + $0xc8] sm:$0xff]  ;;  %v94_v14 = vld [vmem:[#allocation7 + $0xc0] sm:$0xff] }
  0x16   :  { %v204_v32 = vsub.f32 %v1969_v16, %v2866_v25  ;;  %376 = vmatpush.msra.mxu3 %v1952_v5  ;;  %v210_v39 = vsub.f32 %v1974_v19, %v2865_v26  ;;  %v2018_v40 = vand.u32 4294901760, %v76_v29  ;;  %v2861_v41 = vand.u32 4294901760, %v1994_v28  ;;  %v96_v25 = vld [vmem:[#allocation7 + $0xd0] sm:$0xff] }
  0x17   :  { %131 = vmatpush.msra.mxu0 %v1954_v9  ;;  %v193_v37 = vand.u32 4294901760, %v192_v30  ;;  %310 = vmatpush.msra.mxu2 %v1969_v16  ;;  %v199_v38 = vand.u32 4294901760, %v198_v31  ;;  %v2023_v42 = vsub.f32 %v77_v18, %v1991_v27  ;;  %v216_v45 = vsub.f32 %v1977_v20, %v2863_v33  ;;  %v68_v33 = vld [vmem:[#allocation5 + $0x10] sm:$0xff] }
  0x18   :  { %378 = vmatpush.msra.mxu3 %v1954_v9  ;;  %v205_v44 = vand.u32 4294901760, %v204_v32  ;;  %v2029_v46 = vand.u32 4294901760, %v75_v36  ;;  %v222_v47 = vsub.f32 %v1982_v22, %v2862_v34  ;;  %v2859_v48 = vand.u32 4294901760, %v2011_v35 }
  0x19   :  { %133 = vmatpush.msra.mxu0 %v1956_v10  ;;  %194 = vmatpush.msra.mxu1 %v193_v37  ;;  %v211_v50 = vand.u32 4294901760, %v210_v39  ;;  %v2038_v51 = vand.u32 4294901760, %v74_v43  ;;  %v2041_v52 = vsub.f32 %v76_v29, %v2018_v40  ;;  %v228_v53 = vsub.f32 %v1994_v28, %v2861_v41 }
  0x1a   :  { %313 = vmatpush.msra.mxu2 %v1974_v19  ;;  %380 = vmatpush.msra.mxu3 %v1956_v10  ;;  %v2858_v54 = vand.u32 4294901760, %v2023_v42  ;;  %v217_v57 = vand.u32 4294901760, %v216_v45  ;;  %v2050_v58 = vand.u32 4294901760, %v73_v49  ;;  %v2053_v59 = vsub.f32 %v75_v36, %v2029_v46  ;;  %v67_v36 = vld [vmem:[#allocation5 + $0x8] sm:$0xff] }
  0x1b   :  { %135 = vmatpush.msra.mxu0 %v1958_v11  ;;  %200 = vmatpush.msra.mxu1 %v199_v38  ;;  %v223_v60 = vand.u32 4294901760, %v222_v47  ;;  %v234_v61 = vsub.f32 %v2011_v35, %v2859_v48  ;;  %v2061_v63 = vand.u32 4294901760, %v72_v55  ;;  %v2857_v0 = vand.u32 4294901760, %v2041_v52 }
  0x1c   :  { %316 = vmatpush.msra.mxu2 %v1977_v20  ;;  %382 = vmatpush.msra.mxu3 %v1958_v11  ;;  %v2065_v1 = vsub.f32 %v74_v43, %v2038_v51  ;;  %v2067_v2 = vand.u32 4294901760, %v66_v56  ;;  %v229_v7 = vand.u32 4294901760, %v228_v53  ;;  %v240_v8 = vsub.f32 %v2023_v42, %v2858_v54 }
  0x1d   :  { %137 = vmatpush.msra.mxu0 %v1971_v17  ;;  %206 = vmatpush.msra.mxu1 %v205_v44  ;;  %v2075_v13 = vand.u32 4294901760, %v71_v62  ;;  %v2855_v18 = vand.u32 4294901760, %v2053_v59  ;;  %v2079_v29 = vsub.f32 %v73_v49, %v2050_v58  ;;  %v235_v31 = vand.u32 4294901760, %v234_v61  ;;  %v100_v44 = vld [vmem:[#allocation7 + $0xf0] sm:$0xff] }
  0x1e   :  { %319 = vmatpush.msra.mxu2 %v1982_v22  ;;  %384 = vmatpush.msra.mxu3 %v1971_v17  ;;  %v2082_v30 = vsub.f32 %v66_v56, %v2067_v2  ;;  %v2086_v32 = vand.u32 4294901760, %v101_v6  ;;  %v246_v37 = vsub.f32 %v2041_v52, %v2857_v0  ;;  %v2092_v38 = vand.u32 4294901760, %v70_v12  ;;  %v99_v56 = vld [vmem:[#allocation7 + $0xe8] sm:$0xff] }
  0x1f   :  { %139 = vmatpush.msra.mxu0 %v1979_v21  ;;  %212 = vmatpush.msra.mxu1 %v211_v50  ;;  %v2856_v39 = vand.u32 4294901760, %v2065_v1  ;;  %v2096_v43 = vsub.f32 %v72_v55, %v2061_v63  ;;  %v241_v45 = vand.u32 4294901760, %v240_v8  ;;  %v252_v49 = vsub.f32 %v2053_v59, %v2855_v18 }
  0x20   :  { %322 = vmatpush.msra.mxu2 %v1994_v28  ;;  %386 = vmatpush.msra.mxu3 %v1979_v21  ;;  %2885 = vst [vmem:[#allocation12_spill] sm:$0xff] %v2086_v32  ;;  %v2868_v47 = vand.u32 4294901760, %v2082_v30  ;;  %v2860_v50 = vand.u32 4294901760, %v2079_v29  ;;  %v2107_v53 = vsub.f32 %v71_v62, %v2075_v13  ;;  %v2109_v55 = vand.u32 4294901760, %v67_v36 }
  0x21   :  { %141 = vmatpush.msra.mxu0 %v1991_v27  ;;  %218 = vmatpush.msra.mxu1 %v217_v57  ;;  %2886 = vst [vmem:[#allocation13_spill] sm:$0xff] %v2092_v38  ;;  %v2113_v57 = vand.u32 4294901760, %v100_v44  ;;  %v247_v61 = vand.u32 4294901760, %v246_v37  ;;  %v258_v62 = vsub.f32 %v2065_v1, %v2856_v39  ;;  %v2124_v8 = vsub.f32 %v70_v12, %v2092_v38 }
  0x22   :  { %325 = vmatpush.msra.mxu2 %v2011_v35  ;;  %388 = vmatpush.msra.mxu3 %v1991_v27  ;;  %v2131_v18 = vand.u32 4294901760, %v99_v56  ;;  %v253_v37 = vand.u32 4294901760, %v252_v49  ;;  %v264_v12 = vsub.f32 %v2079_v29, %v2860_v50  ;;  %v2867_v39 = vand.u32 4294901760, %v2107_v53 }
  0x23   :  { %143 = vmatpush.msra.mxu0 %v2018_v40  ;;  %224 = vmatpush.msra.mxu1 %v223_v60  ;;  %v2116_v60 = vsub.f32 %v101_v6, %v2086_v32  ;;  %v159_v6 = vsub.f32 %v2082_v30, %v2868_v47  ;;  %v2139_v0 = vsub.f32 %v67_v36, %v2109_v55  ;;  %v259_v49 = vand.u32 4294901760, %v258_v62 }
  0x24   :  { %328 = vmatpush.msra.mxu2 %v2023_v42  ;;  %390 = vmatpush.msra.mxu3 %v2018_v40  ;;  %v2145_v48 = vsub.f32 %v100_v44, %v2113_v57  ;;  %v2871_v36 = vand.u32 4294901760, %v2124_v8  ;;  %v2157_v44 = vsub.f32 %v99_v56, %v2131_v18  ;;  %v276_v62 = vsub.f32 %v2107_v53, %v2867_v39 }
  0x25   :  { %145 = vmatpush.msra.mxu0 %v2029_v46  ;;  %230 = vmatpush.msra.mxu1 %v229_v7  ;;  %v2864_v7 = vand.u32 4294901760, %v2096_v43  ;;  %v2870_v54 = vand.u32 4294901760, %v2116_v60  ;;  %v160_v34 = vand.u32 4294901760, %v159_v6  ;;  %v2179_v47 = vand.u32 4294901760, %v68_v33 }
  0x26   :  { %331 = vmatpush.msra.mxu2 %v2041_v52  ;;  %392 = vmatpush.msra.mxu3 %v2029_v46  ;;  %v2183_v6 = vand.u32 4294901760, %v96_v25 }
  0x27   :  { %147 = vmatpush.msra.mxu0 %v2038_v51  ;;  %236 = vmatpush.msra.mxu1 %v235_v31  ;;  %v98_v31 = vld [vmem:[#allocation7 + $0xe0] sm:$0xff]  ;;  %v270_v50 = vsub.f32 %v2096_v43, %v2864_v7  ;;  %v2872_v7 = vand.u32 4294901760, %v2139_v0  ;;  %v627_v56 = vsub.f32 %v2116_v60, %v2870_v54  ;;  %v2198_v54 = vand.u32 4294901760, %v95_v24 }
  0x28   :  { %334 = vmatpush.msra.mxu2 %v2053_v59  ;;  %394 = vmatpush.msra.mxu3 %v2038_v51  ;;  %v2152_v41 = vand.u32 4294901760, %v98_v31 }
  0x29   :  { %149 = vmatpush.msra.mxu0 %v2050_v58  ;;  %242 = vmatpush.msra.mxu1 %v241_v45  ;;  %v97_v45 = vld [vmem:[#allocation7 + $0xd8] sm:$0xff] }
  0x2a   :  { %337 = vmatpush.msra.mxu2 %v2065_v1  ;;  %396 = vmatpush.msra.mxu3 %v2050_v58  ;;  %v2164_v26 = vand.u32 4294901760, %v97_v45  ;;  %v2177_v39 = vsub.f32 %v98_v31, %v2152_v41  ;;  %v167_v31 = vsub.f32 %v2139_v0, %v2872_v7  ;;  %v2204_v7 = vsub.f32 %v68_v33, %v2179_v47 }
  0x2b   :  { %151 = vmatpush.msra.mxu0 %v2061_v63  ;;  %248 = vmatpush.msra.mxu1 %v247_v61  ;;  %v265_v61 = vand.u32 4294901760, %v264_v12  ;;  %v282_v12 = vsub.f32 %v2124_v8, %v2871_v36  ;;  %v2888_v36 = vand.u32 4294901760, %v2145_v48 }
  0x2c   :  { %340 = vmatpush.msra.mxu2 %v2079_v29  ;;  %398 = vmatpush.msra.mxu3 %v2061_v63  ;;  %2887 = vst [vmem:[#allocation14_spill] sm:$0xff] %v2164_v26 }
  0x2d   :  { %153 = vmatpush.msra.mxu0 %v2075_v13  ;;  %254 = vmatpush.msra.mxu1 %v253_v37  ;;  %v271_v37 = vand.u32 4294901760, %v270_v50  ;;  %v277_v50 = vand.u32 4294901760, %v276_v62  ;;  %v283_v62 = vand.u32 4294901760, %v282_v12  ;;  %v168_v12 = vand.u32 4294901760, %v167_v31  ;;  %v91_v31 = vld [vmem:[#allocation7 + $0xa8] sm:$0xff] }
  0x2e   :  { %343 = vmatpush.msra.mxu2 %v2096_v43  ;;  %400 = vmatpush.msra.mxu3 %v2075_v13 }
  0x2f   :  { %155 = vmatpush.msra.mxu0 %v2092_v38  ;;  %260 = vmatpush.msra.mxu1 %v259_v49  ;;  %v2191_v49 = vsub.f32 %v97_v45, %v2164_v26  ;;  %v2892_v45 = vand.u32 4294901760, %v1969_v16  ;;  %v2894_v16 = vand.u32 4294901760, %v1974_v19  ;;  %v2261_v19 = vand.u32 4294901760, %v91_v31 }
  0x30   :  { %161 = vmatmul.f32.vlgmr.msra.gmra.mxu0 %v160_v34  ;;  %346 = vmatpush.msra.mxu2 %v2107_v53  ;;  %v628_v34 = vand.u32 4294901760, %v627_v56  ;;  %v2890_v56 = vand.u32 4294901760, %v2082_v30 }
  0x31   :  { %266 = vmatpush.msra.mxu1 %v265_v61  ;;  %431 = vmatpush.msrb.mxu0 %v191_v23  ;;  %v633_v61 = vsub.f32 %v2145_v48, %v2888_v36  ;;  %v2889_v23 = vand.u32 4294901760, %v1965_v15  ;;  %v2891_v36 = vand.u32 4294901760, %v2157_v44  ;;  %v93_v15 = vld [vmem:[#allocation7 + $0xb8] sm:$0xff] }
  0x32   :  { %349 = vmatpush.msra.mxu2 %v2124_v8  ;;  %402 = vmatpush.msra.mxu3 %v2092_v38  ;;  %v2229_v33 = vand.u32 4294901760, %v93_v15 }
  0x33   :  { %272 = vmatpush.msra.mxu1 %v271_v37  ;;  %435 = vmatpush.msrb.mxu0 %v2889_v23  ;;  %v639_v38 = vsub.f32 %v2157_v44, %v2891_v36  ;;  %v2213_v37 = vsub.f32 %v96_v25, %v2183_v6  ;;  %v2217_v23 = vand.u32 4294901760, %v94_v14  ;;  %v69_v36 = vld [vmem:[#allocation5 + $0x18] sm:$0xff]  ;;  %v2893_v25 = vand.u32 4294901760, %v2177_v39 }
  0x34   :  { %352 = vmatmul.f32.vlgmr.msra.gmra.mxu2 %v2082_v30  ;;  %406 = vmatmul.f32.vlgmr.msra.gmra.mxu3 %v2890_v56  ;;  %v634_v30 = vand.u32 4294901760, %v633_v61  ;;  %v2222_v56 = vsub.f32 %v95_v24, %v2198_v54  ;;  %v2895_v61 = vand.u32 4294901760, %v2191_v49 }
  0x35   :  { %560 = vmatpush.msrb.mxu2 %v2086_v32  ;;  %278 = vmatpush.msra.mxu1 %v277_v50  ;;  %v645_v50 = vsub.f32 %v2177_v39, %v2893_v25  ;;  %v92_v32 = vld [vmem:[#allocation7 + $0xb0] sm:$0xff]  ;;  %v640_v24 = vand.u32 4294901760, %v639_v38  ;;  %v2242_v25 = vand.u32 4294901760, %v69_v36 }
  0x36   :  { %439 = vmatpush.msrb.mxu0 %v2892_v45  ;;  %629 = vmatpush.msrb.mxu3 %v628_v34  ;;  %v2876_v34 = vand.u32 4294901760, %v2213_v37  ;;  %v2240_v45 = vsub.f32 %v94_v14, %v2217_v23  ;;  %v2246_v38 = vand.u32 4294901760, %v92_v32 }
  0x37   :  { %562 = vmatpush.msrb.mxu2 %v2113_v57  ;;  %284 = vmatpush.msra.mxu1 %v283_v62  ;;  %v651_v62 = vsub.f32 %v2191_v49, %v2895_v61  ;;  %v2255_v61 = vsub.f32 %v93_v15, %v2229_v33  ;;  %v2268_v15 = vsub.f32 %v69_v36, %v2242_v25 }
  0x38   :  { %443 = vmatpush.msrb.mxu0 %v2894_v16  ;;  %286 = vmatmul.f32.vlgmr.msra.gmra.mxu1 %v2067_v2  ;;  %v2897_v16 = vand.u32 4294901760, %v2204_v7 }
  0x39   :  { %169 = vmatmul.f32.gmra.mxu0 %v168_v12  ;;  %510 = vmatpush.msrb.mxu1 %v1948_v3  ;;  %v2896_v12 = vand.u32 4294901760, %v1977_v20  ;;  %v646_v3 = vand.u32 4294901760, %v645_v50  ;;  %v90_v20 = vld [vmem:[#allocation7 + $0xa0] sm:$0xff]  ;;  %v652_v50 = vand.u32 4294901760, %v651_v62  ;;  %v2900_v62 = vand.u32 4294901760, %v1994_v28 }
  0x3a   :  { %564 = vmatpush.msrb.mxu2 %v2131_v18  ;;  %635 = vmatpush.msrb.mxu3 %v634_v30  ;;  %v175_v14 = vsub.f32 %v2204_v7, %v2897_v16  ;;  %v657_v30 = vsub.f32 %v2213_v37, %v2876_v34  ;;  %v2276_v34 = vsub.f32 %v92_v32, %v2246_v38  ;;  %v2879_v36 = vand.u32 4294901760, %v2255_v61 }
  0x3b   :  { %447 = vmatpush.msrb.mxu0 %v2896_v12  ;;  %512 = vmatpush.msrb.mxu1 %v1950_v4  ;;  %v2898_v4 = vand.u32 4294901760, %v1982_v22  ;;  %v89_v22 = vld [vmem:[#allocation7 + $0x98] sm:$0xff]  ;;  %v2281_v12 = vand.u32 4294901760, %v90_v20  ;;  %v2902_v28 = vand.u32 4294901760, %v2240_v45 }
  0x3c   :  { %566 = vmatpush.msrb.mxu2 %v2152_v41  ;;  %641 = vmatpush.msrb.mxu3 %v640_v24  ;;  %v2899_v24 = vand.u32 4294901760, %v2222_v56 }
  0x3d   :  { %451 = vmatpush.msrb.mxu0 %v2898_v4  ;;  %357 = vmatmul.f32.gmra.mxu2 %v2139_v0  ;;  %v176_v4 = vand.u32 4294901760, %v175_v14  ;;  %v669_v32 = vsub.f32 %v2240_v45, %v2902_v28  ;;  %v2294_v14 = vand.u32 4294901760, %v89_v22 }
  0x3e   :  { %514 = vmatpush.msrb.mxu1 %v1952_v5  ;;  %568 = vmatpush.msrb.mxu2 %v2164_v26  ;;  %v663_v16 = vsub.f32 %v2222_v56, %v2899_v24  ;;  %v2901_v5 = vand.u32 4294901760, %v2139_v0  ;;  %v658_v26 = vand.u32 4294901760, %v657_v30  ;;  %v2287_v24 = vsub.f32 %v91_v31, %v2261_v19 }
  0x3f   :  { %647 = vmatpush.msrb.mxu3 %v646_v3  ;;  %455 = vmatpush.msrb.mxu0 %v2900_v62  ;;  %v2881_v3 = vand.u32 4294901760, %v2268_v15  ;;  %v88_v62 = vld [vmem:[#allocation7 + $0x90] sm:$0xff]  ;;  %v2903_v0 = vand.u32 4294901760, %v2011_v35  ;;  %v2880_v31 = vand.u32 4294901760, %v2276_v34  ;;  %v675_v30 = vsub.f32 %v2255_v61, %v2879_v36  ;;  %v62_v36 = vld [vmem:[#allocation2] sm:$0xff] }
  0x40   :  { %412 = vmatmul.f32.gmra.mxu3 %v2901_v5  ;;  %516 = vmatpush.msrb.mxu1 %v1954_v9  ;;  %v664_v9 = vand.u32 4294901760, %v663_v16  ;;  %v87_v5 = vld [vmem:[#allocation7 + $0x88] sm:$0xff]  ;;  %v2882_v35 = vand.u32 4294901760, %v2287_v24  ;;  %v2309_v28 = vand.u32 4294901760, %v88_v62  ;;  %v2904_v16 = vand.u32 4294901760, %v2023_v42 }
  0x41   :  { %570 = vmatpush.msrb.mxu2 %v2183_v6  ;;  %653 = vmatpush.msrb.mxu3 %v652_v50  ;;  %v2305_v50 = vsub.f32 %v90_v20, %v2281_v12  ;;  %v2318_v20 = vsub.f32 %v89_v22, %v2294_v14  ;;  %v2324_v42 = vand.u32 4294901760, %v87_v5 }
  0x42   :  { %459 = vmatpush.msrb.mxu0 %v2903_v0  ;;  %290 = vmatmul.f32.gmra.mxu1 %v2109_v55  ;;  %v86_v0 = vld [vmem:[#allocation7 + $0x80] sm:$0xff] }
  0x43   :  { %177 = vmatmul.f32.gmra.mxu0 %v176_v4  ;;  %518 = vmatpush.msrb.mxu1 %v1956_v10  ;;  %v670_v10 = vand.u32 4294901760, %v669_v32  ;;  %v183_v4 = vsub.f32 %v2268_v15, %v2881_v3  ;;  %v676_v32 = vand.u32 4294901760, %v675_v30  ;;  %v692_v22 = vand.u32 4294901760, %v2305_v50 }
  0x44   :  { %572 = vmatpush.msrb.mxu2 %v2198_v54  ;;  %659 = vmatpush.msrb.mxu3 %v658_v26  ;;  %v681_v26 = vsub.f32 %v2276_v34, %v2880_v31  ;;  %v2338_v31 = vand.u32 4294901760, %v86_v0  ;;  %v2906_v30 = vand.u32 4294901760, %v2053_v59  ;;  %v2907_v3 = vand.u32 4294901760, %v2204_v7 }
  0x45   :  { %463 = vmatpush.msrb.mxu0 %v2904_v16  ;;  %520 = vmatpush.msrb.mxu1 %v1958_v11  ;;  %v2905_v11 = vand.u32 4294901760, %v2041_v52  ;;  %v2336_v16 = vsub.f32 %v88_v62, %v2309_v28  ;;  %v2340_v52 = vand.u32 4294901760, %v62_v36  ;;  %v2349_v62 = vsub.f32 %v87_v5, %v2324_v42 }
  0x46   :  { %574 = vmatpush.msrb.mxu2 %v2217_v23  ;;  %665 = vmatpush.msrb.mxu3 %v664_v9  ;;  %v687_v9 = vsub.f32 %v2287_v24, %v2882_v35  ;;  %v682_v35 = vand.u32 4294901760, %v681_v26  ;;  %v693_v59 = vsub.f32 %v2305_v50, %v692_v22  ;;  %v2363_v5 = vsub.f32 %v86_v0, %v2338_v31  ;;  %v63_v26 = vld [vmem:[#allocation2 + $0x8] sm:$0xff] }
  0x47   :  { %467 = vmatpush.msrb.mxu0 %v2905_v11  ;;  %362 = vmatmul.f32.gmra.mxu2 %v2204_v7  ;;  %v184_v11 = vand.u32 4294901760, %v183_v4 }
  0x48   :  { %522 = vmatpush.msrb.mxu1 %v1971_v17  ;;  %576 = vmatpush.msrb.mxu2 %v2229_v33  ;;  %v698_v17 = vand.u32 4294901760, %v2318_v20  ;;  %v688_v7 = vand.u32 4294901760, %v687_v9  ;;  %v2910_v9 = vand.u32 4294901760, %v2096_v43  ;;  %v2912_v43 = vand.u32 4294901760, %v2268_v15 }
  0x49   :  { %671 = vmatpush.msrb.mxu3 %v670_v10  ;;  %471 = vmatpush.msrb.mxu0 %v2906_v30  ;;  %v2908_v10 = vand.u32 4294901760, %v2065_v1  ;;  %v710_v1 = vand.u32 4294901760, %v2349_v62  ;;  %v2383_v30 = vand.u32 4294901760, %v63_v26 }
  0x4a   :  { %418 = vmatmul.f32.gmra.mxu3 %v2907_v3  ;;  %524 = vmatpush.msrb.mxu1 %v1979_v21  ;;  %v704_v3 = vand.u32 4294901760, %v2336_v16  ;;  %v2360_v21 = vsub.f32 %v62_v36, %v2340_v52  ;;  %v699_v4 = vsub.f32 %v2318_v20, %v698_v17  ;;  %v694_v36 = vand.u32 4294901760, %v693_v59 }
  0x4b   :  { %578 = vmatpush.msrb.mxu2 %v2246_v38  ;;  %677 = vmatpush.msrb.mxu3 %v676_v32  ;;  %v2909_v32 = vand.u32 4294901760, %v2079_v29 }
  0x4c   :  { %475 = vmatpush.msrb.mxu0 %v2908_v10  ;;  %294 = vmatmul.f32.gmra.mxu1 %v2179_v47  ;;  %v593_v0 = vand.u32 4294901760, %v2360_v21  ;;  %v700_v29 = vand.u32 4294901760, %v699_v4 }
  0x4d   :  { %185 = vmatmul.f32.gmra.mxu0 %v184_v11  ;;  %526 = vmatpush.msrb.mxu1 %v1991_v27  ;;  %v705_v27 = vsub.f32 %v2336_v16, %v704_v3  ;;  %v2911_v11 = vand.u32 4294901760, %v2107_v53  ;;  %v2403_v53 = vsub.f32 %v63_v26, %v2383_v30  ;;  %v2914_v26 = vand.u32 4294901760, %v2116_v60 }
  0x4e   :  { %580 = vmatpush.msrb.mxu2 %v2261_v19  ;;  %683 = vmatpush.msrb.mxu3 %v682_v35  ;;  %v716_v35 = vand.u32 4294901760, %v2363_v5 }
  0x4f   :  { %479 = vmatpush.msrb.mxu0 %v2909_v32  ;;  %528 = vmatpush.msrb.mxu1 %v2018_v40  ;;  %v711_v40 = vsub.f32 %v2349_v62, %v710_v1  ;;  %v706_v59 = vand.u32 4294901760, %v705_v27  ;;  %v64_v32 = vld [vmem:[#allocation2 + $0x10] sm:$0xff]  ;;  %v2916_v27 = vand.u32 4294901760, %v2145_v48 }
  0x50   :  { %582 = vmatpush.msrb.mxu2 %v2281_v12  ;;  %689 = vmatpush.msrb.mxu3 %v688_v7  ;;  %v717_v10 = vsub.f32 %v2363_v5, %v716_v35 }
  0x51   :  { %483 = vmatpush.msrb.mxu0 %v2910_v9  ;;  %367 = vmatmul.f32.gmra.mxu2 %v2268_v15  ;;  %v2913_v15 = vand.u32 4294901760, %v2124_v8  ;;  %v601_v8 = vand.u32 4294901760, %v2403_v53 }
  0x52   :  { %530 = vmatpush.msrb.mxu1 %v2029_v46  ;;  %584 = vmatpush.msrb.mxu2 %v2294_v14  ;;  %v594_v46 = vsub.f32 %v2360_v21, %v593_v0  ;;  %v718_v4 = vand.u32 4294901760, %v717_v10 }
  0x53   :  { %695 = vmatpush.msrb.mxu3 %v694_v36  ;;  %487 = vmatpush.msrb.mxu0 %v2911_v11  ;;  %v2915_v36 = vld [vmem:[#allocation13_spill] sm:$0xff]  ;;  %v2919_v11 = vand.u32 4294901760, %v2177_v39 }
  0x54   :  { %424 = vmatmul.f32.gmra.mxu3 %v2912_v43  ;;  %532 = vmatpush.msrb.mxu1 %v2038_v51  ;;  %v712_v51 = vand.u32 4294901760, %v711_v40  ;;  %v595_v7 = vand.u32 4294901760, %v594_v46  ;;  %v2922_v43 = vld [vmem:[#allocation14_spill] sm:$0xff] }
  0x55   :  { %586 = vmatpush.msrb.mxu2 %v2309_v28  ;;  %701 = vmatpush.msrb.mxu3 %v700_v29  ;;  %v2918_v29 = vand.u32 4294901760, %v2157_v44 }
  0x56   :  { %491 = vmatpush.msrb.mxu0 %v2913_v15  ;;  %298 = vmatmul.f32.gmra.mxu1 %v2242_v25 }
  0x57   :  { %493 = vmatmul.f32.vlgmr.msrb.gmra.mxu0 %v2067_v2  ;;  %534 = vmatpush.msrb.mxu1 %v2050_v58  ;;  %v2417_v58 = vand.u32 4294901760, %v64_v32 }
  0x58   :  { %588 = vmatpush.msrb.mxu2 %v2324_v42  ;;  %707 = vmatpush.msrb.mxu3 %v706_v59  ;;  %v2923_v59 = vand.u32 4294901760, %v2222_v56 }
  0x59   :  { %739 = vmatpush.msra.mxu0 %v2116_v60  ;;  %536 = vmatpush.msrb.mxu1 %v2061_v63  ;;  %v602_v63 = vsub.f32 %v2403_v53, %v601_v8  ;;  %v2431_v9 = vsub.f32 %v64_v32, %v2417_v58 }
  0x5a   :  { %590 = vmatpush.msrb.mxu2 %v2338_v31  ;;  %713 = vmatpush.msrb.mxu3 %v712_v51 }
  0x5b   :  { %742 = vmatpush.msra.mxu0 %v2145_v48  ;;  %538 = vmatpush.msrb.mxu1 %v2075_v13  ;;  %v2917_v13 = vld [vmem:[#allocation12_spill] sm:$0xff]  ;;  %v603_v60 = vand.u32 4294901760, %v602_v63  ;;  %v65_v48 = vld [vmem:[#allocation2 + $0x18] sm:$0xff]  ;;  %v609_v40 = vand.u32 4294901760, %v2431_v9 }
  0x5c   :  { %596 = vmatmul.f32.vlgmr.msrb.gmra.mxu2 %v595_v7  ;;  %719 = vmatpush.msrb.mxu3 %v718_v4 }
  0x5d   :  { %866 = vmatpush.msra.mxu2 %v2914_v26  ;;  %745 = vmatpush.msra.mxu0 %v2157_v44  ;;  %v2920_v44 = vand.u32 4294901760, %v2191_v49 }
  0x5e   :  { %540 = vmatpush.msrb.mxu1 %v2915_v36  ;;  %721 = vmatmul.f32.vlgmr.msrb.gmra.mxu3 %v2340_v52 }
  0x5f   :  { %870 = vmatpush.msra.mxu2 %v2916_v27  ;;  %945 = vmatpush.msra.mxu3 %v2917_v13 }
  0x60   :  { %748 = vmatpush.msra.mxu0 %v2177_v39  ;;  %542 = vmatmul.f32.vlgmr.msrb.gmra.mxu1 %v2067_v2  ;;  %v2447_v2 = vand.u32 4294901760, %v65_v48  ;;  %v610_v39 = vsub.f32 %v2431_v9, %v609_v40 }
  0x61   :  { %497 = vmatmul.f32.gmra.mxu0 %v2109_v55  ;;  %807 = vmatpush.msra.mxu1 %v2917_v13 }
  0x62   :  { %874 = vmatpush.msra.mxu2 %v2918_v29  ;;  %947 = vmatpush.msra.mxu3 %v2113_v57 }
  0x63   :  { %751 = vmatpush.msra.mxu0 %v2191_v49  ;;  %809 = vmatpush.msra.mxu1 %v2113_v57  ;;  %v2921_v57 = vand.u32 4294901760, %v2213_v37  ;;  %v611_v49 = vand.u32 4294901760, %v610_v39 }
  0x64   :  { %878 = vmatpush.msra.mxu2 %v2919_v11  ;;  %949 = vmatpush.msra.mxu3 %v2131_v18 }
  0x65   :  { %754 = vmatpush.msra.mxu0 %v2213_v37  ;;  %604 = vmatmul.f32.gmra.mxu2 %v603_v60  ;;  %v2924_v37 = vand.u32 4294901760, %v2240_v45 }
  0x66   :  { %811 = vmatpush.msra.mxu1 %v2131_v18  ;;  %882 = vmatpush.msra.mxu2 %v2920_v44  ;;  %v2463_v18 = vsub.f32 %v65_v48, %v2447_v2 }
  0x67   :  { %951 = vmatpush.msra.mxu3 %v2152_v41  ;;  %757 = vmatpush.msra.mxu0 %v2222_v56  ;;  %v2926_v56 = vand.u32 4294901760, %v2276_v34 }
  0x68   :  { %725 = vmatmul.f32.gmra.mxu3 %v2383_v30  ;;  %813 = vmatpush.msra.mxu1 %v2152_v41  ;;  %v617_v41 = vand.u32 4294901760, %v2463_v18 }
  0x69   :  { %886 = vmatpush.msra.mxu2 %v2921_v57  ;;  %953 = vmatpush.msra.mxu3 %v2922_v43 }
  0x6a   :  { %760 = vmatpush.msra.mxu0 %v2240_v45  ;;  %546 = vmatmul.f32.gmra.mxu1 %v2109_v55  ;;  %v2925_v55 = vand.u32 4294901760, %v2255_v61  ;;  %v2927_v45 = vand.u32 4294901760, %v2287_v24 }
  0x6b   :  { %501 = vmatmul.f32.gmra.mxu0 %v2179_v47  ;;  %815 = vmatpush.msra.mxu1 %v2922_v43  ;;  %v1793_v43 = vld [vmem:[#allocation7 + $0x198] ss:$0 sm:$0xff] }
  0x6c   :  { %890 = vmatpush.msra.mxu2 %v2923_v59  ;;  %955 = vmatpush.msra.mxu3 %v2183_v6 }
  0x6d   :  { %763 = vmatpush.msra.mxu0 %v2255_v61  ;;  %817 = vmatpush.msra.mxu1 %v2183_v6  ;;  %v618_v6 = vsub.f32 %v2463_v18, %v617_v41 }
  0x6e   :  { %894 = vmatpush.msra.mxu2 %v2924_v37  ;;  %957 = vmatpush.msra.mxu3 %v2198_v54 }
  0x6f   :  { %766 = vmatpush.msra.mxu0 %v2276_v34  ;;  %612 = vmatmul.f32.gmra.mxu2 %v611_v49 }
  0x70   :  { %819 = vmatpush.msra.mxu1 %v2198_v54  ;;  %898 = vmatpush.msra.mxu2 %v2925_v55  ;;  %v619_v54 = vand.u32 4294901760, %v618_v6 }
  0x71   :  { %959 = vmatpush.msra.mxu3 %v2217_v23  ;;  %769 = vmatpush.msra.mxu0 %v2287_v24 }
  0x72   :  { %729 = vmatmul.f32.gmra.mxu3 %v2417_v58  ;;  %821 = vmatpush.msra.mxu1 %v2217_v23 }
  0x73   :  { %902 = vmatpush.msra.mxu2 %v2926_v56  ;;  %961 = vmatpush.msra.mxu3 %v2229_v33 }
  0x74   :  { %772 = vmatpush.msra.mxu0 %v2305_v50  ;;  %550 = vmatmul.f32.gmra.mxu1 %v2179_v47 }
  0x75   :  { %505 = vmatmul.f32.gmra.mxu0 %v2242_v25  ;;  %823 = vmatpush.msra.mxu1 %v2229_v33  ;;  %v1792_v33 = vld [vmem:[#allocation7 + $0x190] ss:$0 sm:$0xff] }
  0x76   :  { %906 = vmatpush.msra.mxu2 %v2927_v45  ;;  %963 = vmatpush.msra.mxu3 %v2246_v38 }
  0x77   :  { %775 = vmatpush.msra.mxu0 %v2318_v20  ;;  %825 = vmatpush.msra.mxu1 %v2246_v38 }
  0x78   :  { %910 = vmatpush.msra.mxu2 %v692_v22  ;;  %965 = vmatpush.msra.mxu3 %v2261_v19 }
  0x79   :  { %778 = vmatpush.msra.mxu0 %v2336_v16  ;;  %620 = vmatmul.f32.gmra.mxu2 %v619_v54 }
  0x7a   :  { %827 = vmatpush.msra.mxu1 %v2261_v19  ;;  %914 = vmatpush.msra.mxu2 %v698_v17 }
  0x7b   :  { %967 = vmatpush.msra.mxu3 %v2281_v12  ;;  %781 = vmatpush.msra.mxu0 %v2349_v62 }
  0x7c   :  { %733 = vmatmul.f32.gmra.mxu3 %v2447_v2  ;;  %829 = vmatpush.msra.mxu1 %v2281_v12 }
  0x7d   :  { %918 = vmatpush.msra.mxu2 %v704_v3  ;;  %969 = vmatpush.msra.mxu3 %v2294_v14 }
  0x7e   :  { %784 = vmatpush.msra.mxu0 %v2363_v5  ;;  %554 = vmatmul.f32.gmra.mxu1 %v2242_v25 }
  0x7f   :  { %787 = vmatmul.f32.vlgmr.msra.gmra.mxu0 %v2360_v21  ;;  %831 = vmatpush.msra.mxu1 %v2294_v14 }
  0x80   :  { %922 = vmatpush.msra.mxu2 %v710_v1  ;;  %971 = vmatpush.msra.mxu3 %v2309_v28 }
  0x81   :  { %833 = vmatpush.msra.mxu1 %v2309_v28 }
  0x82   :  { %926 = vmatpush.msra.mxu2 %v716_v35  ;;  %973 = vmatpush.msra.mxu3 %v2324_v42 }
  0x83   :  { %835 = vmatpush.msra.mxu1 %v2324_v42  ;;  %928 = vmatmul.f32.vlgmr.msra.gmra.mxu2 %v2340_v52 }
  0x84   :  { %975 = vmatpush.msra.mxu3 %v2338_v31 }
  0x85   :  { %837 = vmatpush.msra.mxu1 %v2338_v31  ;;  %977 = vmatmul.f32.vlgmr.msra.gmra.mxu3 %v2340_v52 }
  0x86   :  { %841 = vmatmul.f32.vlgmr.msra.gmra.mxu1 %v593_v0 }
  0x87   :  { %792 = vmatmul.f32.gmra.mxu0 %v2403_v53 }
  0x8b   :  { %932 = vmatmul.f32.gmra.mxu2 %v2383_v30 }
  0x8d   :  { %981 = vmatmul.f32.gmra.mxu3 %v2383_v30 }
  0x8e   :  { %847 = vmatmul.f32.gmra.mxu1 %v601_v8 }
  0x8f   :  { %797 = vmatmul.f32.gmra.mxu0 %v2431_v9 }
  0x93   :  { %936 = vmatmul.f32.gmra.mxu2 %v2417_v58 }
  0x95   :  { %985 = vmatmul.f32.gmra.mxu3 %v2417_v58 }
  0x96   :  { %853 = vmatmul.f32.gmra.mxu1 %v609_v40 }
  0x97   :  { %802 = vmatmul.f32.gmra.mxu0 %v2463_v18 }
  0x9b   :  { %940 = vmatmul.f32.gmra.mxu2 %v2447_v2 }
  0x9d   :  { %989 = vmatmul.f32.gmra.mxu3 %v2447_v2 }
  0x9e   :  { %859 = vmatmul.f32.gmra.mxu1 %v617_v41 }
  0xad   :  { %v162_v47 = vpop.f32.mrf.mxu0 }
  0xae   :  { %v163_v23 = vadd.f32 %v1792_v33, %v162_v47 }
  0xb5   :  { %v287_v34 = vpop.f32.mrf.mxu1 }
  0xb6   :  { %v170_v25 = vpop.f32.mrf.mxu0  ;;  %v288_v19 = vadd.f32 %v287_v34, %v163_v23 }
  0xb7   :  { %v353_v38 = vpop.f32.mrf.mxu2  ;;  %v407_v61 = vpop.f32.mrf.mxu3  ;;  %v171_v14 = vadd.f32 %v1792_v33, %v170_v25 }
  0xb8   :  { %v354_v12 = vadd.f32 %v353_v38, %v288_v19 }
  0xba   :  { %v408_v24 = vadd.f32 %v407_v61, %v354_v12 }
  0xbf   :  { %v291_v31 = vpop.f32.mrf.mxu1 }
  0xc0   :  { %v178_v50 = vpop.f32.mrf.mxu0  ;;  %v292_v28 = vadd.f32 %v291_v31, %v171_v14  ;;  %v358_v20 = vpop.f32.mrf.mxu2 }
  0xc1   :  { %v179_v52 = vadd.f32 %v1792_v33, %v178_v50 }
  0xc2   :  { %v359_v42 = vadd.f32 %v358_v20, %v292_v28 }
  0xc3   :  { %v413_v22 = vpop.f32.mrf.mxu3 }
  0xc4   :  { %v414_v16 = vadd.f32 %v413_v22, %v359_v42 }
  0xc9   :  { %v295_v17 = vpop.f32.mrf.mxu1 }
  0xca   :  { %v186_v62 = vpop.f32.mrf.mxu0  ;;  %v296_v3 = vadd.f32 %v295_v17, %v179_v52  ;;  %v363_v21 = vpop.f32.mrf.mxu2 }
  0xcb   :  { %v187_v35 = vadd.f32 %v1792_v33, %v186_v62 }
  0xcc   :  { %v364_v5 = vadd.f32 %v363_v21, %v296_v3 }
  0xcd   :  { %v419_v1 = vpop.f32.mrf.mxu3 }
  0xce   :  { %v420_v0 = vadd.f32 %v419_v1, %v364_v5 }
  0xd3   :  { %v299_v30 = vpop.f32.mrf.mxu1 }
  0xd4   :  { %v300_v46 = vadd.f32 %v299_v30, %v187_v35  ;;  %v494_v10 = vpop.f32.mrf.mxu0  ;;  %v368_v53 = vpop.f32.mrf.mxu2 }
  0xd5   :  { %v495_v15 = vadd.f32 %v494_v10, %v408_v24 }
  0xd6   :  { %v369_v51 = vadd.f32 %v368_v53, %v300_v46 }
  0xd7   :  { %v425_v7 = vpop.f32.mrf.mxu3 }
  0xd8   :  { %v426_v4 = vadd.f32 %v425_v7, %v369_v51 }
  0xdd   :  { %v543_v32 = vpop.f32.mrf.mxu1 }
  0xde   :  { %v498_v8 = vpop.f32.mrf.mxu0  ;;  %v2544_v58 = vadd.f32 %v543_v32, %v495_v15 }
  0xdf   :  { %v499_v26 = vadd.f32 %v498_v8, %v414_v16  ;;  %v597_v63 = vpop.f32.mrf.mxu2 }
  0xe0   :  { %v598_v49 = vadd.f32 %v1793_v43, %v597_v63  ;;  %v103_v63 = vld [vmem:[#allocation7 + $0x108] sm:$0xff] }
  0xe1   :  { %v722_v36 = vpop.f32.mrf.mxu3 }
  0xe2   :  { %v723_v6 = vadd.f32 %v722_v36, %v598_v49 }
  0xe7   :  { %v547_v27 = vpop.f32.mrf.mxu1 }
  0xe8   :  { %v502_v13 = vpop.f32.mrf.mxu0  ;;  %v2546_v9 = vadd.f32 %v547_v27, %v499_v26  ;;  %v605_v60 = vpop.f32.mrf.mxu2  ;;  %v1148_v27 = vand.u32 4294901760, %v103_v63 }
  0xe9   :  { %v503_v29 = vadd.f32 %v502_v13, %v420_v0  ;;  %v606_v45 = vadd.f32 %v1793_v43, %v605_v60 }
  0xea   :  { %1149 = vmatpush.msrb.mxu0 %v1148_v27  ;;  %1284 = vmatpush.msrb.mxu3 %v1148_v27 }
  0xeb   :  { %v726_v48 = vpop.f32.mrf.mxu3 }
  0xec   :  { %v727_v25 = vadd.f32 %v726_v48, %v606_v45  ;;  %v102_v48 = vld [vmem:[#allocation7 + $0x100] sm:$0xff] }
  0xf1   :  { %v551_v40 = vpop.f32.mrf.mxu1 }
  0xf2   :  { %v506_v11 = vpop.f32.mrf.mxu0  ;;  %v2548_v2 = vadd.f32 %v551_v40, %v503_v29  ;;  %v613_v44 = vpop.f32.mrf.mxu2 }
  0xf3   :  { %v507_v39 = vadd.f32 %v506_v11, %v426_v4  ;;  %v614_v14 = vadd.f32 %v1793_v43, %v613_v44  ;;  %v1200_v44 = vsub.f32 %v103_v63, %v1148_v27 }
  0xf5   :  { %v730_v57 = vpop.f32.mrf.mxu3  ;;  %v1201_v49 = vand.u32 4294901760, %v1200_v44  ;;  %1244 = vmatpush.msrb.mxu2 %v1200_v44 }
  0xf6   :  { %v731_v16 = vadd.f32 %v730_v57, %v614_v14 }
  0xfb   :  { %v555_v18 = vpop.f32.mrf.mxu1 }
  0xfc   :  { %v2550_v59 = vadd.f32 %v555_v18, %v507_v39  ;;  %v788_v41 = vpop.f32.mrf.mxu0  ;;  %v621_v37 = vpop.f32.mrf.mxu2  ;;  %v1150_v39 = vand.u32 4294901760, %v102_v48 }
  0xfd   :  { %v789_v56 = vadd.f32 %v788_v41, %v723_v6  ;;  %v622_v0 = vadd.f32 %v1793_v43, %v621_v37 }
  0xfe   :  { %1151 = vmatpush.msrb.mxu0 %v1150_v39  ;;  %v1206_v41 = vsub.f32 %v102_v48, %v1150_v39  ;;  %1286 = vmatpush.msrb.mxu3 %v1150_v39 }
  0xff   :  { %v734_v55 = vpop.f32.mrf.mxu3 }
 0x100   :  { %v735_v4 = vadd.f32 %v734_v55, %v622_v0  ;;  %v1207_v45 = vand.u32 4294901760, %v1206_v41  ;;  %1247 = vmatpush.msrb.mxu2 %v1206_v41  ;;  %1329 = vmatpush.msra.mxu0 %v1201_v49 }
 0x102   :  { %1333 = vmatpush.msra.mxu0 %v1207_v45 }
 0x103   :  { %v842_v54 = vpop.f32.mrf.mxu1 }
 0x104   :  { %v793_v47 = vpop.f32.mrf.mxu0  ;;  %v843_v33 = vadd.f32 %v842_v54, %v789_v56  ;;  %v1202_v54 = vsub.f32 %v1200_v44, %v1201_v49 }
 0x105   :  { %v794_v61 = vadd.f32 %v793_v47, %v727_v25 }
 0x106   :  { %v929_v23 = vpop.f32.mrf.mxu2  ;;  %v1203_v25 = vand.u32 4294901760, %v1202_v54 }
 0x107   :  { %v930_v34 = vadd.f32 %v929_v23, %v843_v33 }
 0x108   :  { %v978_v19 = vpop.f32.mrf.mxu3  ;;  %1204 = vmatpush.msrb.mxu1 %v1203_v25 }
 0x109   :  { %v979_v38 = vadd.f32 %v978_v19, %v930_v34  ;;  %v1208_v19 = vsub.f32 %v1206_v41, %v1207_v45 }
 0x10b   :  { %v994_v12 = vsel %vm993_vm0, %v979_v38, -inf  ;;  %v848_v24 = vpop.f32.mrf.mxu1 }
 0x10c   :  { %v995_v31 = vrot.slane %v994_v12, 4  ;;  %v849_v50 = vadd.f32 %v848_v24, %v794_v61  ;;  %v798_v28 = vpop.f32.mrf.mxu0 }
 0x10d   :  { %v799_v21 = vadd.f32 %v798_v28, %v731_v16 }
 0x10e   :  { %v996_v20 = vmax.f32 %v994_v12, %v995_v31  ;;  %v933_v42 = vpop.f32.mrf.mxu2  ;;  %v1209_v31 = vand.u32 4294901760, %v1208_v19 }
 0x10f   :  { %v934_v22 = vadd.f32 %v933_v42, %v849_v50 }
 0x110   :  { %v997_v52 = vrot.slane %v996_v20, 2  ;;  %v982_v17 = vpop.f32.mrf.mxu3  ;;  %1210 = vmatpush.msrb.mxu1 %v1209_v31 }
 0x111   :  { %v983_v62 = vadd.f32 %v982_v17, %v934_v22 }
 0x112   :  { %v998_v3 = vmax.f32 %v996_v20, %v997_v52  ;;  %1366 = vmatpush.msra.mxu1 %v1148_v27 }
 0x113   :  { %v1001_v5 = vsel %vm993_vm0, %v983_v62, -inf  ;;  %v854_v1 = vpop.f32.mrf.mxu1 }
 0x114   :  { %v999_v35 = vrot.slane %v998_v3, 1  ;;  %v1002_v30 = vrot.slane %v1001_v5, 4  ;;  %v855_v46 = vadd.f32 %v854_v1, %v799_v21  ;;  %v803_v51 = vpop.f32.mrf.mxu0  ;;  %1368 = vmatpush.msra.mxu1 %v1150_v39 }
 0x115   :  { %v804_v29 = vadd.f32 %v803_v51, %v735_v4 }
 0x116   :  { %v1000_v10 = vmax.f32 %v998_v3, %v999_v35  ;;  %v1003_v53 = vmax.f32 %v1001_v5, %v1002_v30  ;;  %v937_v15 = vpop.f32.mrf.mxu2 }
 0x117   :  { %v938_v7 = vadd.f32 %v937_v15, %v855_v46 }
 0x118   :  { %v1022_v32 = vsub.f32 %v979_v38, %v1000_v10  ;;  %v1004_v8 = vrot.slane %v1003_v53, 2  ;;  %v986_v26 = vpop.f32.mrf.mxu3 }
 0x119   :  { %v987_v36 = vadd.f32 %v986_v26, %v938_v7 }
 0x11a   :  { %v1026_v13 = vmul.f32 1.442695, %v1022_v32  ;;  %v1005_v60 = vmax.f32 %v1003_v53, %v1004_v8 }
 0x11b   :  { %v1008_v40 = vsel %vm993_vm0, %v987_v36, -inf  ;;  %v860_v11 = vpop.f32.mrf.mxu1 }
 0x11c   :  { %1795 = vpow2.f32 %v1026_v13  ;;  %v1006_v57 = vrot.slane %v1005_v60, 1  ;;  %v1009_v43 = vrot.slane %v1008_v40, 4  ;;  %v861_v18 = vadd.f32 %v860_v11, %v804_v29 }
 0x11e   :  { %v1007_v37 = vmax.f32 %v1005_v60, %v1006_v57  ;;  %v1010_v55 = vmax.f32 %v1008_v40, %v1009_v43  ;;  %v941_v6 = vpop.f32.mrf.mxu2 }
 0x11f   :  { %v942_v56 = vadd.f32 %v941_v6, %v861_v18 }
 0x120   :  { %v1023_v47 = vsub.f32 %v983_v62, %v1007_v37  ;;  %v1011_v33 = vrot.slane %v1010_v55, 2  ;;  %v990_v23 = vpop.f32.mrf.mxu3 }
 0x121   :  { %v991_v34 = vadd.f32 %v990_v23, %v942_v56 }
 0x122   :  { %v2555_v38 = vpop.eup %1795  ;;  %v1028_v61 = vmul.f32 1.442695, %v1023_v47  ;;  %v1012_v12 = vmax.f32 %v1010_v55, %v1011_v33 }
 0x123   :  { %v1034_v24 = vsel %vm993_vm0, %v2555_v38, 0.0  ;;  %v1015_v14 = vsel %vm993_vm0, %v991_v34, -inf }
 0x124   :  { %v1035_v50 = vrot.slane %v1034_v24, 4  ;;  %1797 = vpow2.f32 %v1028_v61  ;;  %v1013_v28 = vrot.slane %v1012_v12, 1  ;;  %v1016_v20 = vrot.slane %v1015_v14, 4 }
 0x126   :  { %v1036_v42 = vadd.f32 %v1035_v50, %v1034_v24  ;;  %v1014_v22 = vmax.f32 %v1012_v12, %v1013_v28  ;;  %v1017_v16 = vmax.f32 %v1015_v14, %v1016_v20 }
 0x128   :  { %v1037_v52 = vrot.slane %v1036_v42, 2  ;;  %v1024_v17 = vsub.f32 %v987_v36, %v1014_v22  ;;  %v1018_v62 = vrot.slane %v1017_v16, 2 }
 0x12a   :  { %v2560_v3 = vpop.eup %1797  ;;  %v1038_v21 = vadd.f32 %v1037_v52, %v1036_v42  ;;  %v1030_v5 = vmul.f32 1.442695, %v1024_v17  ;;  %v1019_v1 = vmax.f32 %v1017_v16, %v1018_v62 }
 0x12b   :  { %v1041_v0 = vsel %vm993_vm0, %v2560_v3, 0.0 }
 0x12c   :  { %v1039_v35 = vrot.slane %v1038_v21, 1  ;;  %v1042_v30 = vrot.slane %v1041_v0, 4  ;;  %1799 = vpow2.f32 %v1030_v5  ;;  %v1020_v46 = vrot.slane %v1019_v1, 1 }
 0x12e   :  { %v1040_v10 = vadd.f32 %v1039_v35, %v1038_v21  ;;  %v1043_v53 = vadd.f32 %v1042_v30, %v1041_v0  ;;  %v1021_v15 = vmax.f32 %v1019_v1, %v1020_v46 }
 0x130   :  { %1801 = vrcp.f32 %v1040_v10  ;;  %v1044_v51 = vrot.slane %v1043_v53, 2  ;;  %v1025_v7 = vsub.f32 %v991_v34, %v1021_v15  ;;  %v1073_v39 = vand.u32 2147483648, %v1040_v10 }
 0x131   :  { %v1071_v18 = vand.u32 2147483647, %v1040_v10  ;;  %vm1067_vm2 = vweird.f32 %v1040_v10 }
 0x132   :  { %v2564_v4 = vpop.eup %1799  ;;  %v1045_v32 = vadd.f32 %v1044_v51, %v1043_v53  ;;  %v1032_v8 = vmul.f32 1.442695, %v1025_v7  ;;  %v1074_v54 = vor.u32 1.1754944e-38, %v1073_v39 }
 0x133   :  { %v1048_v26 = vsel %vm993_vm0, %v2564_v4, 0.0  ;;  %vm1072_vm4 = vcmp.eq.f32.partialorder %v1071_v18, 8.507059e+37 }
 0x134   :  { %v1046_v63 = vrot.slane %v1045_v32, 1  ;;  %v1049_v36 = vrot.slane %v1048_v26, 4  ;;  %1803 = vpow2.f32 %v1032_v8 }
 0x136   :  { %v1802_v27 = vpop.eup %1801  ;;  %v1047_v13 = vadd.f32 %v1046_v63, %v1045_v32  ;;  %v1050_v60 = vadd.f32 %v1049_v36, %v1048_v26 }
 0x137   :  { %v1063_v29 = vmul.f32 %v1802_v27, %v1040_v10  ;;  %vm1068_vm1 = vweird.f32 %v1802_v27 }
 0x138   :  { %1805 = vrcp.f32 %v1047_v13  ;;  %v1051_v48 = vrot.slane %v1050_v60, 2  ;;  %vm1069_vm3 = vmor %vm1067_vm2, %vm1068_vm1  ;;  %v1087_v61 = vand.u32 2147483648, %v1047_v13  ;;  %v1085_v14 = vand.u32 2147483647, %v1047_v13 }
 0x139   :  { %v1064_v40 = vsub.f32 1.0, %v1063_v29  ;;  %vm1081_vm6 = vweird.f32 %v1047_v13  ;;  %vm1421_vm2 = vcmask 1042434  }
 0x13a   :  { %v2568_v11 = vpop.eup %1803  ;;  %v1052_v44 = vadd.f32 %v1051_v48, %v1050_v60  ;;  %vm1086_vm8 = vcmp.eq.f32.partialorder %v1085_v14, 8.507059e+37 }
 0x13b   :  { %v1055_v57 = vsel %vm993_vm0, %v2568_v11, 0.0  ;;  %v1065_v43 = vmul.f32 %v1802_v27, %v1064_v40 }
 0x13c   :  { %v1053_v49 = vrot.slane %v1052_v44, 1  ;;  %v1056_v41 = vrot.slane %v1055_v57, 4 }
 0x13d   :  { %v1066_v37 = vadd.f32 %v1802_v27, %v1065_v43 }
 0x13e   :  { %v1806_v55 = vpop.eup %1805  ;;  %v1054_v6 = vadd.f32 %v1053_v49, %v1052_v44  ;;  %v1057_v56 = vadd.f32 %v1056_v41, %v1055_v57 }
 0x13f   :  { %v1070_v45 = vsel %vm1069_vm3, %v1802_v27, %v1066_v37  ;;  %v1077_v47 = vmul.f32 %v1806_v55, %v1047_v13  ;;  %vm1082_vm5 = vweird.f32 %v1806_v55  ;;  %vm1423_vm3 = vcmask 1043459  }
 0x140   :  { %1807 = vrcp.f32 %v1054_v6  ;;  %v1058_v33 = vrot.slane %v1057_v56, 2  ;;  %v1075_v23 = vsel %vm1072_vm4, %v1074_v54, %v1070_v45  ;;  %vm1083_vm7 = vmor %vm1081_vm6, %vm1082_vm5  ;;  %v1101_v0 = vand.u32 2147483648, %v1054_v6 }
 0x141   :  { %v1118_v34 = vmul.f32 %v2555_v38, %v1075_v23  ;;  %v1078_v25 = vsub.f32 1.0, %v1077_v47  ;;  %v1088_v38 = vor.u32 1.1754944e-38, %v1087_v61  ;;  %v1099_v46 = vand.u32 2147483647, %v1054_v6 }
 0x142   :  { %v1059_v19 = vadd.f32 %v1058_v33, %v1057_v56  ;;  %vm1095_vm10 = vweird.f32 %v1054_v6  ;;  %v1102_v32 = vor.u32 1.1754944e-38, %v1101_v0 }
 0x143   :  { %v1123_v12 = vsel %vm993_vm0, %v1118_v34, 0  ;;  %v1079_v24 = vmul.f32 %v1806_v55, %v1078_v25  ;;  %vm1100_vm12 = vcmp.eq.f32.partialorder %v1099_v46, 8.507059e+37  ;;  %v118_v25 = vld [vmem:[#allocation7 + $0x180] sm:$0xff] }
 0x144   :  { %v1060_v31 = vrot.slane %v1059_v19, 1  ;;  %v2574_v50 = vand.u32 4294901760, %v1123_v12  ;;  %v2591_v61 = vand.u32 4294901760, %v118_v25 }
 0x145   :  { %v1080_v28 = vadd.f32 %v1806_v55, %v1079_v24 }
 0x146   :  { %v1808_v20 = vpop.eup %1807  ;;  %v1061_v42 = vadd.f32 %v1060_v31, %v1059_v19  ;;  %1212 = vmatmul.f32.vlgmr.msrb.gmra.mxu1 %v2574_v50  ;;  %v1153_v22 = vsub.f32 %v1123_v12, %v2574_v50  ;;  %v117_v12 = vld [vmem:[#allocation7 + $0x178] sm:$0xff]  ;;  %v2597_v14 = vsub.f32 %v118_v25, %v2591_v61 }
 0x147   :  { %v1084_v16 = vsel %vm1083_vm7, %v1806_v55, %v1080_v28  ;;  %v1091_v52 = vmul.f32 %v1808_v20, %v1054_v6  ;;  %vm1096_vm9 = vweird.f32 %v1808_v20  ;;  %v2599_v31 = vand.u32 4294901760, %v117_v12 }
 0x148   :  { %1809 = vrcp.f32 %v1061_v42  ;;  %1250 = vmatmul.f32.vlgmr.msrb.gmra.mxu2 %v1153_v22  ;;  %v1154_v17 = vand.u32 4294901760, %v1153_v22  ;;  %v1089_v62 = vsel %vm1086_vm8, %v1088_v38, %v1084_v16  ;;  %vm1097_vm11 = vmor %vm1095_vm10, %vm1096_vm9  ;;  %v1115_v60 = vand.u32 2147483648, %v1061_v42  ;;  %v115_v38 = vld [vmem:[#allocation7 + $0x168] sm:$0xff] }
 0x149   :  { %v1119_v21 = vmul.f32 %v2560_v3, %v1089_v62  ;;  %v1092_v5 = vsub.f32 1.0, %v1091_v52  ;;  %v1113_v40 = vand.u32 2147483647, %v1061_v42  ;;  %vm1109_vm14 = vweird.f32 %v1061_v42 }
 0x14a   :  { %1290 = vmatmul.f32.vlgmr.msrb.gmra.mxu3 %v1154_v17  ;;  %v1155_v1 = vsub.f32 %v1153_v22, %v1154_v17  ;;  %v1116_v18 = vor.u32 1.1754944e-38, %v1115_v60  ;;  %v111_v60 = vld [vmem:[#allocation7 + $0x148] sm:$0xff] }
 0x14b   :  { %v1126_v35 = vsel %vm993_vm0, %v1119_v21, 0  ;;  %v1093_v30 = vmul.f32 %v1808_v20, %v1092_v5  ;;  %vm1114_vm1 = vcmp.eq.f32.partialorder %v1113_v40, 8.507059e+37  ;;  %v2627_v5 = vand.u32 4294901760, %v115_v38 }
 0x14c   :  { %v1156_v10 = vand.u32 4294901760, %v1155_v1  ;;  %v1160_v53 = vand.u32 4294901760, %v1126_v35  ;;  %v114_v1 = vld [vmem:[#allocation7 + $0x160] sm:$0xff] }
 0x14d   :  { %v1094_v15 = vadd.f32 %v1808_v20, %v1093_v30  ;;  %v2634_v46 = vand.u32 4294901760, %v114_v1 }
 0x14e   :  { %v1810_v51 = vpop.eup %1809  ;;  %1157 = vmatmul.f32.vlgmr.msrb.gmra.mxu0 %v1156_v10  ;;  %1216 = vmatmul.f32.gmra.mxu1 %v1160_v53  ;;  %v1161_v7 = vsub.f32 %v1126_v35, %v1160_v53  ;;  %v2638_v10 = vsub.f32 %v115_v38, %v2627_v5  ;;  %v107_v38 = vld [vmem:[#allocation7 + $0x128] sm:$0xff] }
 0x14f   :  { %v1098_v3 = vsel %vm1097_vm11, %v1808_v20, %v1094_v15  ;;  %v1105_v8 = vmul.f32 %v1810_v51, %v1061_v42  ;;  %vm1110_vm13 = vweird.f32 %v1810_v51  ;;  %v1475_v20 = vand.u32 4294901760, %v2597_v14 }
 0x150   :  { %1255 = vmatmul.f32.gmra.mxu2 %v1161_v7  ;;  %v1162_v26 = vand.u32 4294901760, %v1161_v7  ;;  %v1103_v63 = vsel %vm1100_vm12, %v1102_v32, %v1098_v3  ;;  %vm1111_vm15 = vmor %vm1109_vm14, %vm1110_vm13  ;;  %v2609_v42 = vsub.f32 %v117_v12, %v2599_v31  ;;  %v1493_v3 = vand.u32 4294901760, %v2638_v10 }
 0x151   :  { %v1120_v36 = vmul.f32 %v2564_v4, %v1103_v63  ;;  %v1106_v27 = vsub.f32 1.0, %v1105_v8  ;;  %v1476_v52 = vsub.f32 %v2597_v14, %v1475_v20  ;;  %v112_v8 = vld [vmem:[#allocation7 + $0x150] sm:$0xff] }
 0x152   :  { %1296 = vmatmul.f32.gmra.mxu3 %v1162_v26  ;;  %v1163_v13 = vsub.f32 %v1161_v7, %v1162_v26  ;;  %v1481_v17 = vand.u32 4294901760, %v2609_v42  ;;  %v2646_v7 = vsub.f32 %v114_v1, %v2634_v46  ;;  %v2720_v1 = vand.u32 4294901760, %v107_v38 }
 0x153   :  { %v1129_v29 = vsel %vm993_vm0, %v1120_v36, 0  ;;  %v1107_v48 = vmul.f32 %v1810_v51, %v1106_v27  ;;  %v1477_v0 = vand.u32 4294901760, %v1476_v52  ;;  %v2657_v27 = vand.u32 4294901760, %v112_v8 }
 0x154   :  { %v1164_v44 = vand.u32 4294901760, %v1163_v13  ;;  %v1168_v39 = vand.u32 4294901760, %v1129_v29  ;;  %v1482_v35 = vsub.f32 %v2609_v42, %v1481_v17  ;;  %v1499_v63 = vand.u32 4294901760, %v2646_v7 }
 0x155   :  { %v1108_v57 = vadd.f32 %v1810_v51, %v1107_v48  ;;  %v1494_v13 = vsub.f32 %v2638_v10, %v1493_v3  ;;  %v2670_v40 = vsub.f32 %v112_v8, %v2657_v27 }
 0x156   :  { %1165 = vmatmul.f32.gmra.mxu0 %v1164_v44  ;;  %1220 = vmatmul.f32.gmra.mxu1 %v1168_v39  ;;  %v1169_v43 = vsub.f32 %v1129_v29, %v1168_v39  ;;  %v1483_v15 = vand.u32 4294901760, %v1482_v35  ;;  %v1500_v29 = vsub.f32 %v2646_v7, %v1499_v63  ;;  %v2672_v44 = vand.u32 4294901760, %v111_v60 }
 0x157   :  { %v1112_v49 = vsel %vm1111_vm15, %v1810_v51, %v1108_v57 }
 0x158   :  { %1260 = vmatmul.f32.gmra.mxu2 %v1169_v43  ;;  %v1170_v4 = vand.u32 4294901760, %v1169_v43  ;;  %v1117_v41 = vsel %vm1114_vm1, %v1116_v18, %v1112_v49  ;;  %v110_v18 = vld [vmem:[#allocation7 + $0x140] sm:$0xff]  ;;  %v1501_v49 = vand.u32 4294901760, %v1500_v29 }
 0x159   :  { %v1121_v37 = vmul.f32 %v2568_v11, %v1117_v41  ;;  %v119_v11 = vld [vmem:[#allocation7 + $0x188] sm:$0xff]  ;;  %v1511_v41 = vand.u32 4294901760, %v2670_v40 }
 0x15a   :  { %1302 = vmatmul.f32.gmra.mxu3 %v1170_v4  ;;  %v1171_v55 = vsub.f32 %v1169_v43, %v1170_v4  ;;  %v2586_v34 = vand.u32 4294901760, %v119_v11  ;;  %v1495_v43 = vand.u32 4294901760, %v1494_v13  ;;  %v2737_v13 = vsub.f32 %v107_v38, %v2720_v1 }
 0x15b   :  { %v1132_v6 = vsel %vm993_vm0, %v1121_v37, 0  ;;  %v2687_v37 = vsub.f32 %v111_v60, %v2672_v44  ;;  %vm1419_vm0 = vcmask 1041409  }
 0x15c   :  { %v1172_v56 = vand.u32 4294901760, %v1171_v55  ;;  %v1176_v54 = vand.u32 4294901760, %v1132_v6  ;;  %v2589_v19 = vsub.f32 %v119_v11, %v2586_v34  ;;  %1427 = vmatpush.msra.mxu2 %v2586_v34  ;;  %1623 = vmatpush.msrb.mxu1 %v2586_v34  ;;  %v2689_v55 = vand.u32 4294901760, %v110_v18 }
 0x15e   :  { %1173 = vmatmul.f32.gmra.mxu0 %v1172_v56  ;;  %1224 = vmatmul.f32.gmra.mxu1 %v1176_v54  ;;  %v1177_v45 = vsub.f32 %v1132_v6, %v1176_v54  ;;  %v1469_v24 = vand.u32 4294901760, %v2589_v19  ;;  %v109_v6 = vld [vmem:[#allocation7 + $0x138] sm:$0xff] }
 0x15f   :  { %1429 = vmatpush.msra.mxu2 %v2591_v61  ;;  %1570 = vmatpush.msrb.mxu0 %v2589_v19 }
 0x160   :  { %1265 = vmatmul.f32.gmra.mxu2 %v1177_v45  ;;  %v1178_v47 = vand.u32 4294901760, %v1177_v45  ;;  %1625 = vmatpush.msrb.mxu1 %v2591_v61  ;;  %v1470_v28 = vsub.f32 %v2589_v19, %v1469_v24 }
 0x161   :  { %1431 = vmatpush.msra.mxu2 %v2599_v31  ;;  %1573 = vmatpush.msrb.mxu0 %v2597_v14 }
 0x162   :  { %1308 = vmatmul.f32.gmra.mxu3 %v1178_v47  ;;  %v1179_v33 = vsub.f32 %v1177_v45, %v1178_v47  ;;  %1627 = vmatpush.msrb.mxu1 %v2599_v31  ;;  %v1471_v16 = vand.u32 4294901760, %v1470_v28  ;;  %v2695_v45 = vand.u32 4294901760, %v109_v6  ;;  %v1517_v47 = vand.u32 4294901760, %v2687_v37 }
 0x163   :  { %1576 = vmatpush.msrb.mxu0 %v2609_v42 }
 0x164   :  { %v1180_v23 = vand.u32 4294901760, %v1179_v33  ;;  %1472 = vmatpush.msra.mxu3 %v1471_v16  ;;  %v2701_v33 = vsub.f32 %v110_v18, %v2689_v55  ;;  %v2705_v25 = vsub.f32 %v109_v6, %v2695_v45 }
 0x166   :  { %1181 = vmatmul.f32.gmra.mxu0 %v1180_v23  ;;  %1370 = vmatmul.f32.vlgmr.msra.gmra.mxu1 %v2574_v50  ;;  %v108_v23 = vld [vmem:[#allocation7 + $0x130] sm:$0xff]  ;;  %v1523_v28 = vand.u32 4294901760, %v2701_v33  ;;  %v1529_v16 = vand.u32 4294901760, %v2705_v25 }
 0x167   :  { %1478 = vmatpush.msra.mxu3 %v1477_v0  ;;  %v2707_v12 = vand.u32 4294901760, %v108_v23 }
 0x168   :  { %v1530_v8 = vsub.f32 %v2705_v25, %v1529_v16 }
 0x169   :  { %1484 = vmatpush.msra.mxu3 %v1483_v15  ;;  %v2718_v52 = vsub.f32 %v108_v23, %v2707_v12  ;;  %v1524_v15 = vsub.f32 %v2701_v33, %v1523_v28 }
 0x16a   :  { %v1531_v18 = vand.u32 4294901760, %v1530_v8 }
 0x16b   :  { %v1525_v60 = vand.u32 4294901760, %v1524_v15 }
 0x16e   :  { %1335 = vmatmul.f32.vlgmr.msra.gmra.mxu0 %v2574_v50  ;;  %1374 = vmatmul.f32.gmra.mxu1 %v1160_v53  ;;  %v116_v50 = vld [vmem:[#allocation7 + $0x170] sm:$0xff] }
 0x16f   :  { %v2611_v22 = vand.u32 4294901760, %v116_v50 }
 0x171   :  { %v2621_v62 = vsub.f32 %v116_v50, %v2611_v22  ;;  %1433 = vmatpush.msra.mxu2 %v2611_v22  ;;  %1629 = vmatpush.msrb.mxu1 %v2611_v22  ;;  %v1518_v50 = vsub.f32 %v2687_v37, %v1517_v47 }
 0x173   :  { %v1487_v30 = vand.u32 4294901760, %v2621_v62  ;;  %1579 = vmatpush.msrb.mxu0 %v2621_v62  ;;  %1435 = vmatpush.msra.mxu2 %v2627_v5 }
 0x174   :  { %1631 = vmatpush.msrb.mxu1 %v2627_v5 }
 0x175   :  { %v1488_v51 = vsub.f32 %v2621_v62, %v1487_v30  ;;  %1437 = vmatpush.msra.mxu2 %v2634_v46  ;;  %1582 = vmatpush.msrb.mxu0 %v2638_v10 }
 0x176   :  { %1339 = vmatmul.f32.gmra.mxu0 %v1160_v53  ;;  %1378 = vmatmul.f32.gmra.mxu1 %v1168_v39  ;;  %v113_v53 = vld [vmem:[#allocation7 + $0x158] sm:$0xff] }
 0x177   :  { %v2648_v32 = vand.u32 4294901760, %v113_v53  ;;  %v1489_v26 = vand.u32 4294901760, %v1488_v51  ;;  %1633 = vmatpush.msrb.mxu1 %v2634_v46  ;;  %1585 = vmatpush.msrb.mxu0 %v2646_v7  ;;  %v106_v51 = vld [vmem:[#allocation7 + $0x120] sm:$0xff] }
 0x178   :  { %v2741_v29 = vand.u32 4294901760, %v106_v51 }
 0x179   :  { %v2655_v36 = vsub.f32 %v113_v53, %v2648_v32  ;;  %1439 = vmatpush.msra.mxu2 %v2648_v32  ;;  %1490 = vmatpush.msra.mxu3 %v1489_v26  ;;  %v1519_v53 = vand.u32 4294901760, %v1518_v50  ;;  %v1535_v26 = vand.u32 4294901760, %v2718_v52 }
 0x17a   :  { %1635 = vmatpush.msrb.mxu1 %v2648_v32  ;;  %v2751_v6 = vsub.f32 %v106_v51, %v2741_v29 }
 0x17b   :  { %v1505_v48 = vand.u32 4294901760, %v2655_v36  ;;  %1441 = vmatpush.msra.mxu2 %v2657_v27  ;;  %1588 = vmatpush.msrb.mxu0 %v2655_v36 }
 0x17c   :  { %1637 = vmatpush.msrb.mxu1 %v2657_v27  ;;  %1496 = vmatpush.msra.mxu3 %v1495_v43  ;;  %v105_v43 = vld [vmem:[#allocation7 + $0x118] sm:$0xff]  ;;  %v1547_v38 = vand.u32 4294901760, %v2751_v6 }
 0x17d   :  { %v1506_v4 = vsub.f32 %v2655_v36, %v1505_v48  ;;  %1443 = vmatpush.msra.mxu2 %v2672_v44  ;;  %1591 = vmatpush.msrb.mxu0 %v2670_v40 }
 0x17e   :  { %1343 = vmatmul.f32.gmra.mxu0 %v1168_v39  ;;  %1382 = vmatmul.f32.gmra.mxu1 %v1176_v54 }
 0x17f   :  { %v1507_v56 = vand.u32 4294901760, %v1506_v4  ;;  %1639 = vmatpush.msrb.mxu1 %v2672_v44  ;;  %1502 = vmatpush.msra.mxu3 %v1501_v49  ;;  %v1536_v49 = vsub.f32 %v2718_v52, %v1535_v26  ;;  %v1541_v4 = vand.u32 4294901760, %v2737_v13 }
 0x180   :  { %1445 = vmatpush.msra.mxu2 %v2689_v55  ;;  %1594 = vmatpush.msrb.mxu0 %v2687_v37 }
 0x181   :  { %1641 = vmatpush.msrb.mxu1 %v2689_v55  ;;  %1508 = vmatpush.msra.mxu3 %v1507_v56  ;;  %v2753_v56 = vand.u32 4294901760, %v105_v43  ;;  %v1537_v23 = vand.u32 4294901760, %v1536_v49 }
 0x182   :  { %1447 = vmatpush.msra.mxu2 %v2695_v45  ;;  %1597 = vmatpush.msrb.mxu0 %v2701_v33 }
 0x183   :  { %1643 = vmatpush.msrb.mxu1 %v2695_v45 }
 0x184   :  { %1449 = vmatpush.msra.mxu2 %v2707_v12  ;;  %1600 = vmatpush.msrb.mxu0 %v2705_v25 }
 0x185   :  { %1645 = vmatpush.msrb.mxu1 %v2707_v12 }
 0x186   :  { %1347 = vmatmul.f32.gmra.mxu0 %v1176_v54  ;;  %v1512_v54 = vsub.f32 %v2670_v40, %v1511_v41  ;;  %1451 = vmatpush.msra.mxu2 %v2720_v1 }
 0x187   :  { %1603 = vmatpush.msrb.mxu0 %v2718_v52  ;;  %1647 = vmatpush.msrb.mxu1 %v2720_v1 }
 0x188   :  { %v1513_v11 = vand.u32 4294901760, %v1512_v54  ;;  %v104_v54 = vld [vmem:[#allocation7 + $0x110] sm:$0xff]  ;;  %1453 = vmatpush.msra.mxu2 %v2741_v29 }
 0x189   :  { %v2759_v50 = vand.u32 4294901760, %v104_v54  ;;  %1606 = vmatpush.msrb.mxu0 %v2737_v13  ;;  %1649 = vmatpush.msrb.mxu1 %v2741_v29 }
 0x18a   :  { %1514 = vmatpush.msra.mxu3 %v1513_v11  ;;  %v1542_v11 = vsub.f32 %v2737_v13, %v1541_v4  ;;  %1455 = vmatpush.msra.mxu2 %v2753_v56 }
 0x18b   :  { %v2769_v51 = vsub.f32 %v104_v54, %v2759_v50  ;;  %1609 = vmatpush.msrb.mxu0 %v2751_v6  ;;  %1651 = vmatpush.msrb.mxu1 %v2753_v56 }
 0x18c   :  { %1520 = vmatpush.msra.mxu3 %v1519_v53  ;;  %v2765_v53 = vsub.f32 %v105_v43, %v2753_v56  ;;  %v1543_v15 = vand.u32 4294901760, %v1542_v11  ;;  %1457 = vmatpush.msra.mxu2 %v2759_v50 }
 0x18d   :  { %v2883_v43 = vand.u32 4294901760, %v2769_v51  ;;  %1653 = vmatpush.msrb.mxu1 %v2759_v50 }
 0x18e   :  { %1526 = vmatpush.msra.mxu3 %v1525_v60  ;;  %v1548_v60 = vsub.f32 %v2751_v6, %v1547_v38  ;;  %1664 = vmatpush.msrb.mxu2 %v1469_v24 }
 0x18f   :  { %1612 = vmatpush.msrb.mxu0 %v2765_v53  ;;  %v1560_v11 = vsub.f32 %v2769_v51, %v2883_v43 }
 0x190   :  { %1532 = vmatpush.msra.mxu3 %v1531_v18  ;;  %v2884_v18 = vand.u32 4294901760, %v2765_v53  ;;  %v1549_v54 = vand.u32 4294901760, %v1548_v60  ;;  %1668 = vmatpush.msrb.mxu2 %v1475_v20 }
 0x191   :  { %1615 = vmatpush.msrb.mxu0 %v2769_v51 }
 0x192   :  { %1538 = vmatpush.msra.mxu3 %v1537_v23  ;;  %v1554_v23 = vsub.f32 %v2765_v53, %v2884_v18  ;;  %1672 = vmatpush.msrb.mxu2 %v1481_v17 }
 0x194   :  { %1544 = vmatpush.msra.mxu3 %v1543_v15  ;;  %v1555_v24 = vand.u32 4294901760, %v1554_v23  ;;  %v1561_v15 = vand.u32 4294901760, %v1560_v11  ;;  %1676 = vmatpush.msrb.mxu2 %v1487_v30 }
 0x196   :  { %1550 = vmatpush.msra.mxu3 %v1549_v54  ;;  %1680 = vmatpush.msrb.mxu2 %v1493_v3 }
 0x198   :  { %1556 = vmatpush.msra.mxu3 %v1555_v24  ;;  %1684 = vmatpush.msrb.mxu2 %v1499_v63 }
 0x19a   :  { %1562 = vmatpush.msra.mxu3 %v1561_v15  ;;  %1688 = vmatpush.msrb.mxu2 %v1505_v48 }
 0x19c   :  { %1731 = vmatpush.msrb.mxu3 %v2586_v34  ;;  %1692 = vmatpush.msrb.mxu2 %v1511_v41 }
 0x19e   :  { %1733 = vmatpush.msrb.mxu3 %v2591_v61  ;;  %1696 = vmatpush.msrb.mxu2 %v1517_v47 }
 0x1a0   :  { %1735 = vmatpush.msrb.mxu3 %v2599_v31  ;;  %1700 = vmatpush.msrb.mxu2 %v1523_v28 }
 0x1a2   :  { %1737 = vmatpush.msrb.mxu3 %v2611_v22  ;;  %1704 = vmatpush.msrb.mxu2 %v1529_v16 }
 0x1a4   :  { %1739 = vmatpush.msrb.mxu3 %v2627_v5  ;;  %1708 = vmatpush.msrb.mxu2 %v1535_v26 }
 0x1a6   :  { %1741 = vmatpush.msrb.mxu3 %v2634_v46  ;;  %1712 = vmatpush.msrb.mxu2 %v1541_v4 }
 0x1a8   :  { %1743 = vmatpush.msrb.mxu3 %v2648_v32  ;;  %1716 = vmatpush.msrb.mxu2 %v1547_v38 }
 0x1aa   :  { %1745 = vmatpush.msrb.mxu3 %v2657_v27 }
 0x1ac   :  { %1747 = vmatpush.msrb.mxu3 %v2672_v44 }
 0x1ae   :  { %1749 = vmatpush.msrb.mxu3 %v2689_v55  ;;  %v2929_v55 = vand.u32 4294901760, %v2769_v51 }
 0x1b0   :  { %1751 = vmatpush.msrb.mxu3 %v2695_v45 }
 0x1b2   :  { %1753 = vmatpush.msrb.mxu3 %v2707_v12 }
 0x1b4   :  { %1755 = vmatpush.msrb.mxu3 %v2720_v1 }
 0x1b6   :  { %1757 = vmatpush.msrb.mxu3 %v2741_v29 }
 0x1b8   :  { %1759 = vmatpush.msrb.mxu3 %v2753_v56 }
 0x1ba   :  { %1761 = vmatpush.msrb.mxu3 %v2759_v50 }
 0x1c3   :  { %v2625_v21 = vpop.f32.mrf.mxu1 }
 0x1cb   :  { %v2675_v39 = vpop.f32.mrf.mxu0  ;;  %v2677_v57 = vpop.f32.mrf.mxu1 }
 0x1cc   :  { %v1251_v19 = vpop.f32.mrf.mxu2  ;;  %v1214_v60 = vadd.f32 %v2625_v21, %v2675_v39 }
 0x1cd   :  { %v1291_v43 = vpop.f32.mrf.mxu3 }
 0x1ce   :  { %v1252_v14 = vadd.f32 %v1251_v19, %v1214_v60 }
 0x1d0   :  { %v1292_v17 = vadd.f32 %v1291_v43, %v1252_v14 }
 0x1d3   :  { %v2724_v0 = vpop.f32.mrf.mxu0  ;;  %v2726_v35 = vpop.f32.mrf.mxu1 }
 0x1d4   :  { %v1256_v42 = vpop.f32.mrf.mxu2  ;;  %v1218_v34 = vadd.f32 %v2677_v57, %v2724_v0  ;;  %v2928_v57 = vand.u32 4294901760, %v2765_v53 }
 0x1d5   :  { %v1297_v31 = vpop.f32.mrf.mxu3 }
 0x1d6   :  { %v1257_v21 = vadd.f32 %v1256_v42, %v1218_v34  ;;  %1720 = vmatpush.msrb.mxu2 %v2928_v57 }
 0x1d8   :  { %v1298_v5 = vadd.f32 %v1297_v31, %v1257_v21  ;;  %1724 = vmatpush.msrb.mxu2 %v2929_v55  ;;  %v1794_v31 = vld [vmem:[#allocation7 + $0x1a0] ss:$0 sm:$0xff] }
 0x1db   :  { %v1174_v8 = vpop.f32.mrf.mxu0  ;;  %v2782_v49 = vpop.f32.mrf.mxu1 }
 0x1dc   :  { %v1222_v7 = vadd.f32 %v2726_v35, %v1174_v8  ;;  %v1261_v46 = vpop.f32.mrf.mxu2 }
 0x1dd   :  { %v1303_v27 = vpop.f32.mrf.mxu3 }
 0x1e3   :  { %v1182_v18 = vpop.f32.mrf.mxu0  ;;  %v1371_v20 = vpop.f32.mrf.mxu1 }
 0x1e4   :  { %v1226_v41 = vadd.f32 %v2782_v49, %v1182_v18 }
 0x1e5   :  { %v1309_v13 = vpop.f32.mrf.mxu3 }
 0x1eb   :  { %v1336_v61 = vpop.f32.mrf.mxu0  ;;  %v1375_v10 = vpop.f32.mrf.mxu1 }
 0x1ec   :  { %v1337_v62 = vadd.f32 %v1336_v61, %v1292_v17 }
 0x1ee   :  { %v1372_v30 = vadd.f32 %v1371_v20, %v1337_v62 }
 0x1f0   :  { %v1386_v22 = vmul.f32 %v1372_v30, %v2544_v58  ;;  %v1262_v58 = vadd.f32 %v1261_v46, %v1222_v7 }
 0x1f2   :  { %v1390_v3 = vrot.slane %v1386_v22, 4  ;;  %v1304_v44 = vadd.f32 %v1303_v27, %v1262_v58 }
 0x1f3   :  { %v1340_v63 = vpop.f32.mrf.mxu0  ;;  %v1379_v47 = vpop.f32.mrf.mxu1 }
 0x1f4   :  { %v1391_v36 = vadd.f32 %v1390_v3, %v1386_v22  ;;  %v1341_v48 = vadd.f32 %v1340_v63, %v1298_v5 }
 0x1f6   :  { %v1376_v32 = vadd.f32 %v1375_v10, %v1341_v48  ;;  %v1392_v40 = vrot.slane %v1391_v36, 2 }
 0x1f8   :  { %v1387_v39 = vmul.f32 %v1376_v32, %v2546_v9  ;;  %v1393_v25 = vadd.f32 %v1392_v40, %v1391_v36  ;;  %v1266_v9 = vpop.f32.mrf.mxu2 }
 0x1f9   :  { %v1267_v45 = vadd.f32 %v1266_v9, %v1226_v41 }
 0x1fa   :  { %v1396_v37 = vrot.slane %v1387_v39, 4  ;;  %v1394_v35 = vrot.slane %v1393_v25, 1 }
 0x1fb   :  { %v1344_v33 = vpop.f32.mrf.mxu0  ;;  %v1310_v4 = vadd.f32 %v1309_v13, %v1267_v45  ;;  %v1383_v43 = vpop.f32.mrf.mxu1 }
 0x1fc   :  { %v1397_v28 = vadd.f32 %v1396_v37, %v1387_v39  ;;  %v1345_v16 = vadd.f32 %v1344_v33, %v1304_v44  ;;  %v1395_v1 = vadd.f32 %v1394_v35, %v1393_v25 }
 0x1fe   :  { %v1398_v52 = vrot.slane %v1397_v28, 2  ;;  %v1380_v0 = vadd.f32 %v1379_v47, %v1345_v16 }
 0x200   :  { %v1399_v26 = vadd.f32 %v1398_v52, %v1397_v28  ;;  %v1388_v12 = vmul.f32 %v1380_v0, %v2548_v2 }
 0x202   :  { %v1400_v6 = vrot.slane %v1399_v26, 1  ;;  %v1402_v38 = vrot.slane %v1388_v12, 4 }
 0x203   :  { %v1348_v53 = vpop.f32.mrf.mxu0 }
 0x204   :  { %v1401_v51 = vadd.f32 %v1400_v6, %v1399_v26  ;;  %v1403_v8 = vadd.f32 %v1402_v38, %v1388_v12  ;;  %v1349_v18 = vadd.f32 %v1348_v53, %v1310_v4 }
 0x206   :  { %v1404_v29 = vrot.slane %v1403_v8, 2  ;;  %v1384_v49 = vadd.f32 %v1383_v43, %v1349_v18  ;;  %v1420_v54 = vsel %vm1419_vm0, %v1401_v51, %v1395_v1 }
 0x208   :  { %v1405_v23 = vadd.f32 %v1404_v29, %v1403_v8  ;;  %v1389_v2 = vmul.f32 %v1384_v49, %v2550_v59 }
 0x20a   :  { %v1406_v56 = vrot.slane %v1405_v23, 1  ;;  %v1408_v11 = vrot.slane %v1389_v2, 4 }
 0x20c   :  { %v1407_v19 = vadd.f32 %v1406_v56, %v1405_v23  ;;  %v1409_v24 = vadd.f32 %v1408_v11, %v1389_v2 }
 0x20e   :  { %v1410_v15 = vrot.slane %v1409_v24, 2  ;;  %v1422_v50 = vsel %vm1421_vm2, %v1407_v19, %v1420_v54 }
 0x210   :  { %v1411_v60 = vadd.f32 %v1410_v15, %v1409_v24 }
 0x212   :  { %v1412_v14 = vrot.slane %v1411_v60, 1 }
 0x214   :  { %v1413_v20 = vadd.f32 %v1412_v14, %v1411_v60 }
 0x216   :  { %v1424_v42 = vsel %vm1423_vm3, %v1413_v20, %v1422_v50 }
 0x217   :  { %v1458_v17 = vand.u32 4294901760, %v1424_v42 }
 0x219   :  { %1564 = vmatmul.f32.vlgmr.msra.gmra.mxu3 %v1458_v17  ;;  %v1459_v34 = vsub.f32 %v1424_v42, %v1458_v17 }
 0x21b   :  { %1618 = vmatmul.f32.vlgmr.msrb.gmra.mxu0 %v1459_v34  ;;  %v1460_v61 = vand.u32 4294901760, %v1459_v34 }
 0x21d   :  { %1657 = vmatmul.f32.vlgmr.msrb.gmra.mxu1 %v1460_v61  ;;  %v1461_v62 = vsub.f32 %v1459_v34, %v1460_v61 }
 0x21f   :  { %v1462_v59 = vand.u32 4294901760, %v1461_v62 }
 0x221   :  { %1463 = vmatmul.f32.vlgmr.msra.gmra.mxu2 %v1462_v59  ;;  %1763 = vmatmul.f32.vlgmr.msrb.gmra.mxu3 %v1458_v17 }
 0x229   :  { %1726 = vmatmul.f32.vlgmr.msrb.gmra.mxu2 %v1458_v17 }
 0x298   :  { %v1619_v5 = vpop.f32.mrf.mxu0 }
 0x29a   :  { %v1658_v3 = vpop.f32.mrf.mxu1 }
 0x29c   :  { %v1565_v21 = vpop.f32.mrf.mxu3 }
 0x2a4   :  { %v1464_v30 = vpop.f32.mrf.mxu2  ;;  %v1764_v48 = vpop.f32.mrf.mxu3 }
 0x2a5   :  { %v1465_v22 = vadd.f32 %v1794_v31, %v1464_v30 }
 0x2a7   :  { %v1566_v10 = vadd.f32 %v1565_v21, %v1465_v22 }
 0x2a9   :  { %v1620_v7 = vadd.f32 %v1619_v5, %v1566_v10 }
 0x2ab   :  { %v1659_v46 = vadd.f32 %v1658_v3, %v1620_v7 }
 0x2ac   :  { %v1727_v63 = vpop.f32.mrf.mxu2 }
 0x2ad   :  { %v1728_v36 = vadd.f32 %v1727_v63, %v1659_v46 }
 0x2af   :  { %v1765_v58 = vadd.f32 %v1764_v48, %v1728_v36 }
 0x2b1   :  { %1767 = vst [vmem:[#allocation8] sm:$0xf] %v1765_v58 }
 0x2b2   :  { %1778 = dma.vmem_to_hbm [thread:$0]  %s1774_s2, 64, %s1776_s30, [#allocation4]  }
 0x2b3   :  { %1911 = dma.done.wait [#allocation4], 64  }
 0x2b4   :  { %1912 = vsyncadd [#allocation4], 4294967232 }
 0x2b5   :  { %1783 = vsyncpa [#allocation3], 1 }
 0x2b6   :  { %1784 = vsyncpa [#allocation6], 1 }
 0x2b7   :  { %1785 = vsyncpa [#allocation4], 1 }

</bundles_post_ra>
